<compile_context>
chip_gen: v7x
topology: tpu7x:2x2x1
jax: 0.10.0
libtpu: 0.0.40
codegen_flags: <defaults>
</compile_context>

<pallas_src>
import functools

import jax
import jax.numpy as jnp
from jax.experimental import pallas as pl
from jax.experimental.pallas import tpu as pltpu


MXU_DTYPE = jnp.bfloat16      # MXU operand dtype (f32 accumulation)
STREAM_DTYPE = jnp.bfloat16   # HBM<->VMEM streamed pre-gates / per-step outputs

# Per-gate input scale (PyTorch gate order: i, f, g, o).  The 0.5 on i/f/o
# folds the rewrite sigmoid(x) == 0.5 + 0.5*tanh(x/2) into the pre-gates and
# W_hh^T, so the kernel only issues tanh (1 EUP op) instead of sigmoid
# (exp + reciprocal = 2 EUP ops) on the serial critical path.
GATE_IN_SCALE = (0.5, 0.5, 1.0, 0.5)


def _round_up(x, m):
    return (x + m - 1) // m * m


def _cdiv(a, b):
    return -(-a // b)


def _vmem_limit_bytes():
    """Per-generation VMEM request: physical capacity minus headroom."""
    try:
        cap = int(pltpu.get_tpu_info().vmem_capacity_bytes)
    except Exception:
        cap = 64 * 1024 * 1024          # conservative fallback (v7x per-TC)
    # Leave headroom for compiler-internal scratch / spill.
    return max(cap - 16 * 1024 * 1024, 32 * 1024 * 1024)


def _prep_gate_padded(a, h, h_p, scale=False):
    """Split trailing 4*h axis into gate chunks, optionally apply
    GATE_IN_SCALE, zero-pad each gate chunk to h_p lanes, flatten to 4*h_p."""
    lead = a.shape[:-1]
    a = a.reshape(*lead, 4, h)
    if scale:
        s = jnp.asarray(GATE_IN_SCALE, a.dtype).reshape(
            (1,) * len(lead) + (4, 1))
        a = a * s
    if h_p != h:
        a = jnp.pad(a, [(0, 0)] * (a.ndim - 1) + [(0, h_p - h)])
    return a.reshape(*lead, 4 * h_p)


# ----------------------------------------------------------------------------
# Pallas kernel: LSTM recurrence only.  Grid = (batch_tile, time_block).
#   pre_ref : (t_blk, b_blk, 4*hid_p)  bf16  precomputed x@W_ih^T + bias (scaled)
#   w_ref   : (hid_p, 4*hid_p)         bf16  W_hh^T (gate-scaled, gate-padded)
#   out_ref : (t_blk, b_blk, hid_p)    bf16  per-step hidden states
#   h_ref   : (b_blk, hid_p)           f32   resident carry + final h
#   c_ref   : (b_blk, hid_p)           f32   resident carry + final c
# ----------------------------------------------------------------------------
def _lstm_recurrence_kernel(pre_ref, w_ref, out_ref, h_ref, c_ref,
                            *, t_blk, seq_len, hid_p, unroll, tail_partial):
    tb = pl.program_id(1)   # time-block index (sequential / "arbitrary" axis)

    # PyTorch default: h0 = c0 = 0.  h_ref/c_ref have a constant index map
    # along the time axis, so they stay VMEM-resident across time blocks.
    @pl.when(tb == 0)
    def _():
        h_ref[...] = jnp.zeros_like(h_ref)
        c_ref[...] = jnp.zeros_like(c_ref)

    w_hh_t = w_ref[...]     # (hid_p, 4*hid_p) bf16, VMEM resident

    def make_step(masked):
        def step(i, carry):
            h_prev, c_prev = carry
            # Serial critical path: one (b_blk, hid_p) x (hid_p, 4*hid_p) MXU
            # matmul with f32 accumulation.
            gates = pre_ref[i].astype(jnp.float32) + jnp.dot(
                h_prev.astype(MXU_DTYPE), w_hh_t,
                preferred_element_type=jnp.float32)

            # Lane-aligned gate slices (hid_p multiple of 128). PyTorch order:
            # input, forget, cell-candidate, output.  sigmoid via tanh (the
            # 0.5 input scale was folded into pre / W_hh^T at prep time).
            i_g = 0.5 + 0.5 * jnp.tanh(gates[:, 0 * hid_p:1 * hid_p])
            f_g = 0.5 + 0.5 * jnp.tanh(gates[:, 1 * hid_p:2 * hid_p])
            g_g = jnp.tanh(gates[:, 2 * hid_p:3 * hid_p])
            o_g = 0.5 + 0.5 * jnp.tanh(gates[:, 3 * hid_p:4 * hid_p])

            c_new = f_g * c_prev + i_g * g_g
            h_new = o_g * jnp.tanh(c_new)

            if masked:
                # Only the (statically known) partial tail block pays for this.
                valid = (tb * t_blk + i) < seq_len
                h_new = jnp.where(valid, h_new, h_prev)
                c_new = jnp.where(valid, c_new, c_prev)

            out_ref[i] = h_new.astype(out_ref.dtype)
            return h_new, c_new
        return step

    def run(masked):
        h_fin, c_fin = jax.lax.fori_loop(
            0, t_blk, make_step(masked), (h_ref[...], c_ref[...]),
            unroll=unroll)
        h_ref[...] = h_fin
        c_ref[...] = c_fin

    if not tail_partial:
        run(masked=False)
    else:
        is_tail = tb == pl.num_programs(1) - 1

        @pl.when(jnp.logical_not(is_tail))
        def _():
            run(masked=False)

        @pl.when(is_tail)
        def _():
            run(masked=True)


def lstm_layer_pallas(x, w_ih, w_hh, b_ih, b_hh):
    """One LSTM layer over a full sequence.

    x:     (seq, batch, in_dim) float32 or bfloat16
    w_ih:  (4H, in_dim), w_hh: (4H, H), b_ih / b_hh: (4H,)
    returns (outputs (seq, batch, H) bf16, h_T (batch, H) f32, c_T (batch, H) f32)
    """
    seq, batch, _ = x.shape
    H = w_hh.shape[1]

    # TODO(synk): for H < 128 the per-gate lane padding to 128 inflates
    # pre/out/W_hh by 128/H; a packed (4H <= 128)-lane layout with in-vreg
    # gate splits would remove that redundancy for tiny models.
    hid_p = _round_up(H, 128)

    # Batch tiling: split batch across two tiles when large enough so v7x's
    # second TensorCore can take one ("parallel" axis); no-op on v5e/v6e.
    n_btiles = 2 if batch >= 16 else 1
    batch_p = _round_up(batch, 8 * n_btiles)
    b_blk = batch_p // n_btiles

    # --- VMEM budget -> time-block size; weights stay resident --------------
    vmem_limit = _vmem_limit_bytes()
    w_bytes = hid_p * 4 * hid_p * 2                       # bf16 W_hh^T
    single_buffer_w = w_bytes > (4 << 20)                 # only when it matters
    w_resident = w_bytes * (1 if single_buffer_w else 2)
    stream_per_t = b_blk * (4 * hid_p + hid_p) * 2 * 2    # bf16 pre+out, 2 bufs
    avail = max(vmem_limit // 2 - w_resident, 8 * stream_per_t)
    t_blk_max = int(min(128, max(8, avail // stream_per_t)))

    # Balanced time blocks: minimal tail padding; >=2 blocks when worthwhile
    # so pre/out DMAs overlap compute.
    n_tblocks = _cdiv(seq, t_blk_max)
    if seq >= 16:
        n_tblocks = max(n_tblocks, 2)
    t_blk = _cdiv(seq, n_tblocks)
    n_tblocks = _cdiv(seq, t_blk)
    seq_p = n_tblocks * t_blk
    tail_partial = seq_p != seq

    # Partial unroll for big hidden sizes / long blocks to avoid vreg spills.
    unroll = True if (hid_p <= 256 and t_blk <= 32) else 8

    # --- Hoisted input projection: one big bf16 MXU matmul, f32 accum -------
    pre = jnp.einsum(
        "sbi,gi->sbg", x.astype(MXU_DTYPE), w_ih.astype(MXU_DTYPE),
        preferred_element_type=jnp.float32) + (b_ih + b_hh)   # (seq, batch, 4H)
    pre = _prep_gate_padded(pre, H, hid_p, scale=True)         # (seq, batch, 4Hp)
    pre = jnp.pad(pre, ((0, seq_p - seq), (0, batch_p - batch), (0, 0)))
    pre = pre.astype(STREAM_DTYPE)

    # W_hh^T, gate-scaled, gate-padded and row-padded; zero padding keeps
    # padded lanes / rows exactly 0 through the recurrence.
    w_hh_t = _prep_gate_padded(jnp.transpose(w_hh), H, hid_p, scale=True)
    w_hh_t = jnp.pad(w_hh_t, ((0, hid_p - H), (0, 0))).astype(MXU_DTYPE)

    kernel = functools.partial(
        _lstm_recurrence_kernel, t_blk=t_blk, seq_len=seq, hid_p=hid_p,
        unroll=unroll, tail_partial=tail_partial)

    if single_buffer_w:
        # Constant-index-map weights need only one buffer; halves resident
        # VMEM cost (matters on v7x's 64 MiB/TC at large H).
        # TODO(synk): on v5e, explicit matmul_push_rhs could latch W_hh^T in
        # the MXU across the unrolled timesteps; not attempted here.
        w_spec = pl.BlockSpec((hid_p, 4 * hid_p), lambda bi, ti: (0, 0),
                              pipeline_mode=pl.Buffered(1))
    else:
        w_spec = pl.BlockSpec((hid_p, 4 * hid_p), lambda bi, ti: (0, 0))

    grid_spec = pltpu.PrefetchScalarGridSpec(
        num_scalar_prefetch=0,
        grid=(n_btiles, n_tblocks),
        in_specs=[
            pl.BlockSpec((t_blk, b_blk, 4 * hid_p), lambda bi, ti: (ti, bi, 0)),
            w_spec,
        ],
        out_specs=(
            pl.BlockSpec((t_blk, b_blk, hid_p), lambda bi, ti: (ti, bi, 0)),
            pl.BlockSpec((b_blk, hid_p), lambda bi, ti: (bi, 0)),   # h carry/out
            pl.BlockSpec((b_blk, hid_p), lambda bi, ti: (bi, 0)),   # c carry/out
        ),
    )

    out, h_n, c_n = pl.pallas_call(
        kernel,
        out_shape=(
            jax.ShapeDtypeStruct((seq_p, batch_p, hid_p), STREAM_DTYPE),
            jax.ShapeDtypeStruct((batch_p, hid_p), jnp.float32),
            jax.ShapeDtypeStruct((batch_p, hid_p), jnp.float32),
        ),
        grid_spec=grid_spec,
        compiler_params=pltpu.CompilerParams(
            # Batch tiles are independent; the time axis carries state.
            dimension_semantics=("parallel", "arbitrary"),
            vmem_limit_bytes=vmem_limit,
        ),
    )(pre, w_hh_t)

    return out[:seq, :batch, :H], h_n[:batch, :H], c_n[:batch, :H]


# ----------------------------------------------------------------------------
# Encoder: embedding (glue) + stacked LSTM layers (Pallas recurrence kernels)
# ----------------------------------------------------------------------------
class EncoderPallas:
    def __init__(self, input_dim, emb_dim, hid_dim, n_layers, key):
        self.input_dim = input_dim
        self.emb_dim = emb_dim
        self.hid_dim = hid_dim
        self.n_layers = n_layers

        keys = jax.random.split(key, 1 + 4 * n_layers)
        # nn.Embedding default init: N(0, 1)
        self.embedding = jax.random.normal(
            keys[0], (input_dim, emb_dim), dtype=jnp.float32)

        # nn.LSTM default init: U(-1/sqrt(H), 1/sqrt(H)) for all params
        k = 1.0 / jnp.sqrt(jnp.float32(hid_dim))
        self.layers = []
        for layer in range(n_layers):
            in_dim = emb_dim if layer == 0 else hid_dim
            kw = keys[1 + 4 * layer: 1 + 4 * (layer + 1)]
            w_ih = jax.random.uniform(kw[0], (4 * hid_dim, in_dim),
                                      minval=-k, maxval=k, dtype=jnp.float32)
            w_hh = jax.random.uniform(kw[1], (4 * hid_dim, hid_dim),
                                      minval=-k, maxval=k, dtype=jnp.float32)
            b_ih = jax.random.uniform(kw[2], (4 * hid_dim,),
                                      minval=-k, maxval=k, dtype=jnp.float32)
            b_hh = jax.random.uniform(kw[3], (4 * hid_dim,),
                                      minval=-k, maxval=k, dtype=jnp.float32)
            self.layers.append((w_ih, w_hh, b_ih, b_hh))

    def __call__(self, src):
        # src: (seq_len, batch) int32  (PyTorch nn.LSTM default is seq-first)
        embedded = jnp.take(self.embedding, src, axis=0)   # (seq, batch, emb)
        # TODO(synk): nn.Dropout / inter-layer LSTM dropout are identity in
        # eval mode; training-mode random masking is omitted here.
        x = embedded
        hiddens, cells = [], []
        for (w_ih, w_hh, b_ih, b_hh) in self.layers:
            x, h_n, c_n = lstm_layer_pallas(x, w_ih, w_hh, b_ih, b_hh)
            hiddens.append(h_n)
            cells.append(c_n)
        hidden = jnp.stack(hiddens, axis=0)   # (n_layers, batch, hid_dim)
        cell = jnp.stack(cells, axis=0)       # (n_layers, batch, hid_dim)
        return hidden, cell


# ----------------------------------------------------------------------------
# Pure-JAX reference (f32) for a sanity check of the recurrence/padding logic.
# ----------------------------------------------------------------------------
def _lstm_reference(x, layers):
    def one_layer(x, params):
        w_ih, w_hh, b_ih, b_hh = params
        H = w_hh.shape[1]
        B = x.shape[1]

        def step(carry, x_t):
            h, c = carry
            gates = x_t @ w_ih.T + h @ w_hh.T + b_ih + b_hh
            i = jax.nn.sigmoid(gates[:, 0 * H:1 * H])
            f = jax.nn.sigmoid(gates[:, 1 * H:2 * H])
            g = jnp.tanh(gates[:, 2 * H:3 * H])
            o = jax.nn.sigmoid(gates[:, 3 * H:4 * H])
            c = f * c + i * g
            h = o * jnp.tanh(c)
            return (h, c), h

        init = (jnp.zeros((B, H), jnp.float32), jnp.zeros((B, H), jnp.float32))
        (h_n, c_n), out = jax.lax.scan(step, init, x)
        return out, h_n, c_n

    hs, cs = [], []
    for p in layers:
        x, h, c = one_layer(x, p)
        hs.append(h)
        cs.append(c)
    return jnp.stack(hs, axis=0), jnp.stack(cs, axis=0)


if __name__ == "__main__":
    # Small, deterministic example shapes consistent with the module's forward.
    vocab_size = 50      # stands in for len(en_vocab)
    emb_dim = 32
    hid_dim = 32
    n_layers = 2
    seq_len = 8
    batch = 2

    key = jax.random.PRNGKey(0)
    k_params, k_src = jax.random.split(key)

    encoder = EncoderPallas(vocab_size, emb_dim, hid_dim, n_layers, k_params)
    src = jax.random.randint(k_src, (seq_len, batch), 0, vocab_size,
                             dtype=jnp.int32)

    hidden, cell = encoder(src)
    jax.block_until_ready((hidden, cell))

    assert hidden.shape == (n_layers, batch, hid_dim)
    assert cell.shape == (n_layers, batch, hid_dim)

    # Numerical sanity check against a pure-JAX f32 LSTM.  Tolerance is loose
    # because the kernel streams bf16 pre-gates / inter-layer activations and
    # uses bf16 MXU operands (f32 accumulation everywhere).
    embedded = jnp.take(encoder.embedding, src, axis=0)
    ref_h, ref_c = _lstm_reference(embedded, encoder.layers)
    assert jnp.allclose(hidden, ref_h, atol=1e-1, rtol=1e-1)
    assert jnp.allclose(cell, ref_c, atol=1e-1, rtol=1e-1)

    print("KERNEL_OK")
</pallas_src>

<mosaic_0001>
module attributes {stable_mosaic.version = 11 : i64} {
  func.func @_lstm_recurrence_kernel(%arg0: i32, %arg1: i32, %arg2: memref<8x8x512xbf16, #tpu.memory_space<vmem>>, %arg3: memref<128x512xbf16, #tpu.memory_space<vmem>>, %arg4: memref<8x8x128xbf16, #tpu.memory_space<vmem>>, %arg5: memref<8x128xf32, #tpu.memory_space<vmem>>, %arg6: memref<8x128xf32, #tpu.memory_space<vmem>>) attributes {dimension_semantics = [#tpu.dimension_semantics<parallel>, #tpu.dimension_semantics<arbitrary>], iteration_bounds = array<i64: 1, 1>, scalar_prefetch = 0 : i64, scratch_operands = 0 : i64, tpu.core_type = #tpu.core_type<tc>, window_params = [{transform_indices = @transform_0, window_bounds = array<i64: 8, 8, 512>}, {pipeline_mode = #tpu.pipeline_mode<synchronous>, transform_indices = @transform_1, window_bounds = array<i64: 128, 512>}, {transform_indices = @transform_2, window_bounds = array<i64: 8, 8, 128>}, {transform_indices = @transform_3, window_bounds = array<i64: 8, 128>}, {transform_indices = @transform_4, window_bounds = array<i64: 8, 128>}]} {
    %c0_i32 = arith.constant 0 : i32
    %0 = arith.cmpi eq, %arg1, %c0_i32 : i32
    %1 = arith.extui %0 : i1 to i32
    %c0_i32_0 = arith.constant 0 : i32
    %2 = arith.cmpi ne, %1, %c0_i32_0 : i32
    scf.if %2 {
      %cst_98 = arith.constant 0.000000e+00 : f32
      %304 = vector.broadcast %cst_98 : f32 to vector<8x128xf32>
      %c0_99 = arith.constant 0 : index
      %c0_100 = arith.constant 0 : index
      %305 = vector.load %arg5[%c0_99, %c0_100] : memref<8x128xf32, #tpu.memory_space<vmem>>, vector<8x128xf32>
      tpu.vector_store %arg5[%c0_99, %c0_100], %304 {strides = array<i32>} : memref<8x128xf32, #tpu.memory_space<vmem>>, vector<8x128xf32>,
      %cst_101 = arith.constant 0.000000e+00 : f32
      %306 = vector.broadcast %cst_101 : f32 to vector<8x128xf32>
      %c0_102 = arith.constant 0 : index
      %c0_103 = arith.constant 0 : index
      %307 = vector.load %arg6[%c0_102, %c0_103] : memref<8x128xf32, #tpu.memory_space<vmem>>, vector<8x128xf32>
      tpu.vector_store %arg6[%c0_102, %c0_103], %306 {strides = array<i32>} : memref<8x128xf32, #tpu.memory_space<vmem>>, vector<8x128xf32>,
    } else {
    }
    %c0 = arith.constant 0 : index
    %c0_1 = arith.constant 0 : index
    %3 = vector.load %arg3[%c0, %c0_1] : memref<128x512xbf16, #tpu.memory_space<vmem>>, vector<128x512xbf16>
    %c0_2 = arith.constant 0 : index
    %c0_3 = arith.constant 0 : index
    %4 = vector.load %arg5[%c0_2, %c0_3] : memref<8x128xf32, #tpu.memory_space<vmem>>, vector<8x128xf32>
    %c0_4 = arith.constant 0 : index
    %c0_5 = arith.constant 0 : index
    %5 = vector.load %arg6[%c0_4, %c0_5] : memref<8x128xf32, #tpu.memory_space<vmem>>, vector<8x128xf32>
    %c0_i32_6 = arith.constant 0 : i32
    %6 = arith.index_cast %c0_i32_6 : i32 to index
    %c0_7 = arith.constant 0 : index
    %c0_8 = arith.constant 0 : index
    %7 = vector.load %arg2[%6, %c0_7, %c0_8] : memref<8x8x512xbf16, #tpu.memory_space<vmem>>, vector<1x8x512xbf16>
    %8 = vector.shape_cast %7 : vector<1x8x512xbf16> to vector<8x512xbf16>
    %9 = arith.extf %8 : vector<8x512xbf16> to vector<8x512xf32>
    %10 = arith.truncf %4 : vector<8x128xf32> to vector<8x128xbf16>
    %cst = arith.constant dense<0.000000e+00> : vector<8x512xf32>
    %11 = tpu.matmul %10, %3, %cst {dimension_numbers = #tpu.dot_dimension_numbers<[1], [0], [0], [1], [0, 0, 1, 1], [], []>} : vector<8x128xbf16>, vector<128x512xbf16>, vector<8x512xf32> -> vector<8x512xf32>
    %12 = arith.addf %9, %11 : vector<8x512xf32>
    %13 = vector.extract_strided_slice %12 {offsets = [0, 0], sizes = [8, 128], strides = [1, 1]} : vector<8x512xf32> to vector<8x128xf32>
    %14 = math.tanh %13 : vector<8x128xf32>
    %cst_9 = arith.constant 5.000000e-01 : f32
    %15 = vector.broadcast %cst_9 : f32 to vector<8x128xf32>
    %16 = arith.mulf %15, %14 : vector<8x128xf32>
    %cst_10 = arith.constant 5.000000e-01 : f32
    %17 = vector.broadcast %cst_10 : f32 to vector<8x128xf32>
    %18 = arith.addf %17, %16 : vector<8x128xf32>
    %19 = vector.extract_strided_slice %12 {offsets = [0, 128], sizes = [8, 128], strides = [1, 1]} : vector<8x512xf32> to vector<8x128xf32>
    %20 = math.tanh %19 : vector<8x128xf32>
    %cst_11 = arith.constant 5.000000e-01 : f32
    %21 = vector.broadcast %cst_11 : f32 to vector<8x128xf32>
    %22 = arith.mulf %21, %20 : vector<8x128xf32>
    %cst_12 = arith.constant 5.000000e-01 : f32
    %23 = vector.broadcast %cst_12 : f32 to vector<8x128xf32>
    %24 = arith.addf %23, %22 : vector<8x128xf32>
    %25 = vector.extract_strided_slice %12 {offsets = [0, 256], sizes = [8, 128], strides = [1, 1]} : vector<8x512xf32> to vector<8x128xf32>
    %26 = math.tanh %25 : vector<8x128xf32>
    %27 = vector.extract_strided_slice %12 {offsets = [0, 384], sizes = [8, 128], strides = [1, 1]} : vector<8x512xf32> to vector<8x128xf32>
    %28 = math.tanh %27 : vector<8x128xf32>
    %cst_13 = arith.constant 5.000000e-01 : f32
    %29 = vector.broadcast %cst_13 : f32 to vector<8x128xf32>
    %30 = arith.mulf %29, %28 : vector<8x128xf32>
    %cst_14 = arith.constant 5.000000e-01 : f32
    %31 = vector.broadcast %cst_14 : f32 to vector<8x128xf32>
    %32 = arith.addf %31, %30 : vector<8x128xf32>
    %33 = arith.mulf %24, %5 : vector<8x128xf32>
    %34 = arith.mulf %18, %26 : vector<8x128xf32>
    %35 = arith.addf %33, %34 : vector<8x128xf32>
    %36 = math.tanh %35 : vector<8x128xf32>
    %37 = arith.mulf %32, %36 : vector<8x128xf32>
    %38 = arith.truncf %37 : vector<8x128xf32> to vector<8x128xbf16>
    %39 = arith.index_cast %c0_i32_6 : i32 to index
    %c0_15 = arith.constant 0 : index
    %c0_16 = arith.constant 0 : index
    %40 = vector.load %arg4[%39, %c0_15, %c0_16] : memref<8x8x128xbf16, #tpu.memory_space<vmem>>, vector<1x8x128xbf16>
    %41 = vector.shape_cast %40 : vector<1x8x128xbf16> to vector<8x128xbf16>
    %42 = vector.shape_cast %38 : vector<8x128xbf16> to vector<1x8x128xbf16>
    tpu.vector_store %arg4[%39, %c0_15, %c0_16], %42 {strides = array<i32>} : memref<8x8x128xbf16, #tpu.memory_space<vmem>>, vector<1x8x128xbf16>,
    %c1_i32 = arith.constant 1 : i32
    %43 = arith.index_cast %c1_i32 : i32 to index
    %c0_17 = arith.constant 0 : index
    %c0_18 = arith.constant 0 : index
    %44 = vector.load %arg2[%43, %c0_17, %c0_18] : memref<8x8x512xbf16, #tpu.memory_space<vmem>>, vector<1x8x512xbf16>
    %45 = vector.shape_cast %44 : vector<1x8x512xbf16> to vector<8x512xbf16>
    %46 = arith.extf %45 : vector<8x512xbf16> to vector<8x512xf32>
    %47 = arith.truncf %37 : vector<8x128xf32> to vector<8x128xbf16>
    %cst_19 = arith.constant dense<0.000000e+00> : vector<8x512xf32>
    %48 = tpu.matmul %47, %3, %cst_19 {dimension_numbers = #tpu.dot_dimension_numbers<[1], [0], [0], [1], [0, 0, 1, 1], [], []>} : vector<8x128xbf16>, vector<128x512xbf16>, vector<8x512xf32> -> vector<8x512xf32>
    %49 = arith.addf %46, %48 : vector<8x512xf32>
    %50 = vector.extract_strided_slice %49 {offsets = [0, 0], sizes = [8, 128], strides = [1, 1]} : vector<8x512xf32> to vector<8x128xf32>
    %51 = math.tanh %50 : vector<8x128xf32>
    %cst_20 = arith.constant 5.000000e-01 : f32
    %52 = vector.broadcast %cst_20 : f32 to vector<8x128xf32>
    %53 = arith.mulf %52, %51 : vector<8x128xf32>
    %cst_21 = arith.constant 5.000000e-01 : f32
    %54 = vector.broadcast %cst_21 : f32 to vector<8x128xf32>
    %55 = arith.addf %54, %53 : vector<8x128xf32>
    %56 = vector.extract_strided_slice %49 {offsets = [0, 128], sizes = [8, 128], strides = [1, 1]} : vector<8x512xf32> to vector<8x128xf32>
    %57 = math.tanh %56 : vector<8x128xf32>
    %cst_22 = arith.constant 5.000000e-01 : f32
    %58 = vector.broadcast %cst_22 : f32 to vector<8x128xf32>
    %59 = arith.mulf %58, %57 : vector<8x128xf32>
    %cst_23 = arith.constant 5.000000e-01 : f32
    %60 = vector.broadcast %cst_23 : f32 to vector<8x128xf32>
    %61 = arith.addf %60, %59 : vector<8x128xf32>
    %62 = vector.extract_strided_slice %49 {offsets = [0, 256], sizes = [8, 128], strides = [1, 1]} : vector<8x512xf32> to vector<8x128xf32>
    %63 = math.tanh %62 : vector<8x128xf32>
    %64 = vector.extract_strided_slice %49 {offsets = [0, 384], sizes = [8, 128], strides = [1, 1]} : vector<8x512xf32> to vector<8x128xf32>
    %65 = math.tanh %64 : vector<8x128xf32>
    %cst_24 = arith.constant 5.000000e-01 : f32
    %66 = vector.broadcast %cst_24 : f32 to vector<8x128xf32>
    %67 = arith.mulf %66, %65 : vector<8x128xf32>
    %cst_25 = arith.constant 5.000000e-01 : f32
    %68 = vector.broadcast %cst_25 : f32 to vector<8x128xf32>
    %69 = arith.addf %68, %67 : vector<8x128xf32>
    %70 = arith.mulf %61, %35 : vector<8x128xf32>
    %71 = arith.mulf %55, %63 : vector<8x128xf32>
    %72 = arith.addf %70, %71 : vector<8x128xf32>
    %73 = math.tanh %72 : vector<8x128xf32>
    %74 = arith.mulf %69, %73 : vector<8x128xf32>
    %75 = arith.truncf %74 : vector<8x128xf32> to vector<8x128xbf16>
    %76 = arith.index_cast %c1_i32 : i32 to index
    %c0_26 = arith.constant 0 : index
    %c0_27 = arith.constant 0 : index
    %77 = vector.load %arg4[%76, %c0_26, %c0_27] : memref<8x8x128xbf16, #tpu.memory_space<vmem>>, vector<1x8x128xbf16>
    %78 = vector.shape_cast %77 : vector<1x8x128xbf16> to vector<8x128xbf16>
    %79 = vector.shape_cast %75 : vector<8x128xbf16> to vector<1x8x128xbf16>
    tpu.vector_store %arg4[%76, %c0_26, %c0_27], %79 {strides = array<i32>} : memref<8x8x128xbf16, #tpu.memory_space<vmem>>, vector<1x8x128xbf16>,
    %c2_i32 = arith.constant 2 : i32
    %80 = arith.index_cast %c2_i32 : i32 to index
    %c0_28 = arith.constant 0 : index
    %c0_29 = arith.constant 0 : index
    %81 = vector.load %arg2[%80, %c0_28, %c0_29] : memref<8x8x512xbf16, #tpu.memory_space<vmem>>, vector<1x8x512xbf16>
    %82 = vector.shape_cast %81 : vector<1x8x512xbf16> to vector<8x512xbf16>
    %83 = arith.extf %82 : vector<8x512xbf16> to vector<8x512xf32>
    %84 = arith.truncf %74 : vector<8x128xf32> to vector<8x128xbf16>
    %cst_30 = arith.constant dense<0.000000e+00> : vector<8x512xf32>
    %85 = tpu.matmul %84, %3, %cst_30 {dimension_numbers = #tpu.dot_dimension_numbers<[1], [0], [0], [1], [0, 0, 1, 1], [], []>} : vector<8x128xbf16>, vector<128x512xbf16>, vector<8x512xf32> -> vector<8x512xf32>
    %86 = arith.addf %83, %85 : vector<8x512xf32>
    %87 = vector.extract_strided_slice %86 {offsets = [0, 0], sizes = [8, 128], strides = [1, 1]} : vector<8x512xf32> to vector<8x128xf32>
    %88 = math.tanh %87 : vector<8x128xf32>
    %cst_31 = arith.constant 5.000000e-01 : f32
    %89 = vector.broadcast %cst_31 : f32 to vector<8x128xf32>
    %90 = arith.mulf %89, %88 : vector<8x128xf32>
    %cst_32 = arith.constant 5.000000e-01 : f32
    %91 = vector.broadcast %cst_32 : f32 to vector<8x128xf32>
    %92 = arith.addf %91, %90 : vector<8x128xf32>
    %93 = vector.extract_strided_slice %86 {offsets = [0, 128], sizes = [8, 128], strides = [1, 1]} : vector<8x512xf32> to vector<8x128xf32>
    %94 = math.tanh %93 : vector<8x128xf32>
    %cst_33 = arith.constant 5.000000e-01 : f32
    %95 = vector.broadcast %cst_33 : f32 to vector<8x128xf32>
    %96 = arith.mulf %95, %94 : vector<8x128xf32>
    %cst_34 = arith.constant 5.000000e-01 : f32
    %97 = vector.broadcast %cst_34 : f32 to vector<8x128xf32>
    %98 = arith.addf %97, %96 : vector<8x128xf32>
    %99 = vector.extract_strided_slice %86 {offsets = [0, 256], sizes = [8, 128], strides = [1, 1]} : vector<8x512xf32> to vector<8x128xf32>
    %100 = math.tanh %99 : vector<8x128xf32>
    %101 = vector.extract_strided_slice %86 {offsets = [0, 384], sizes = [8, 128], strides = [1, 1]} : vector<8x512xf32> to vector<8x128xf32>
    %102 = math.tanh %101 : vector<8x128xf32>
    %cst_35 = arith.constant 5.000000e-01 : f32
    %103 = vector.broadcast %cst_35 : f32 to vector<8x128xf32>
    %104 = arith.mulf %103, %102 : vector<8x128xf32>
    %cst_36 = arith.constant 5.000000e-01 : f32
    %105 = vector.broadcast %cst_36 : f32 to vector<8x128xf32>
    %106 = arith.addf %105, %104 : vector<8x128xf32>
    %107 = arith.mulf %98, %72 : vector<8x128xf32>
    %108 = arith.mulf %92, %100 : vector<8x128xf32>
    %109 = arith.addf %107, %108 : vector<8x128xf32>
    %110 = math.tanh %109 : vector<8x128xf32>
    %111 = arith.mulf %106, %110 : vector<8x128xf32>
    %112 = arith.truncf %111 : vector<8x128xf32> to vector<8x128xbf16>
    %113 = arith.index_cast %c2_i32 : i32 to index
    %c0_37 = arith.constant 0 : index
    %c0_38 = arith.constant 0 : index
    %114 = vector.load %arg4[%113, %c0_37, %c0_38] : memref<8x8x128xbf16, #tpu.memory_space<vmem>>, vector<1x8x128xbf16>
    %115 = vector.shape_cast %114 : vector<1x8x128xbf16> to vector<8x128xbf16>
    %116 = vector.shape_cast %112 : vector<8x128xbf16> to vector<1x8x128xbf16>
    tpu.vector_store %arg4[%113, %c0_37, %c0_38], %116 {strides = array<i32>} : memref<8x8x128xbf16, #tpu.memory_space<vmem>>, vector<1x8x128xbf16>,
    %c3_i32 = arith.constant 3 : i32
    %117 = arith.index_cast %c3_i32 : i32 to index
    %c0_39 = arith.constant 0 : index
    %c0_40 = arith.constant 0 : index
    %118 = vector.load %arg2[%117, %c0_39, %c0_40] : memref<8x8x512xbf16, #tpu.memory_space<vmem>>, vector<1x8x512xbf16>
    %119 = vector.shape_cast %118 : vector<1x8x512xbf16> to vector<8x512xbf16>
    %120 = arith.extf %119 : vector<8x512xbf16> to vector<8x512xf32>
    %121 = arith.truncf %111 : vector<8x128xf32> to vector<8x128xbf16>
    %cst_41 = arith.constant dense<0.000000e+00> : vector<8x512xf32>
    %122 = tpu.matmul %121, %3, %cst_41 {dimension_numbers = #tpu.dot_dimension_numbers<[1], [0], [0], [1], [0, 0, 1, 1], [], []>} : vector<8x128xbf16>, vector<128x512xbf16>, vector<8x512xf32> -> vector<8x512xf32>
    %123 = arith.addf %120, %122 : vector<8x512xf32>
    %124 = vector.extract_strided_slice %123 {offsets = [0, 0], sizes = [8, 128], strides = [1, 1]} : vector<8x512xf32> to vector<8x128xf32>
    %125 = math.tanh %124 : vector<8x128xf32>
    %cst_42 = arith.constant 5.000000e-01 : f32
    %126 = vector.broadcast %cst_42 : f32 to vector<8x128xf32>
    %127 = arith.mulf %126, %125 : vector<8x128xf32>
    %cst_43 = arith.constant 5.000000e-01 : f32
    %128 = vector.broadcast %cst_43 : f32 to vector<8x128xf32>
    %129 = arith.addf %128, %127 : vector<8x128xf32>
    %130 = vector.extract_strided_slice %123 {offsets = [0, 128], sizes = [8, 128], strides = [1, 1]} : vector<8x512xf32> to vector<8x128xf32>
    %131 = math.tanh %130 : vector<8x128xf32>
    %cst_44 = arith.constant 5.000000e-01 : f32
    %132 = vector.broadcast %cst_44 : f32 to vector<8x128xf32>
    %133 = arith.mulf %132, %131 : vector<8x128xf32>
    %cst_45 = arith.constant 5.000000e-01 : f32
    %134 = vector.broadcast %cst_45 : f32 to vector<8x128xf32>
    %135 = arith.addf %134, %133 : vector<8x128xf32>
    %136 = vector.extract_strided_slice %123 {offsets = [0, 256], sizes = [8, 128], strides = [1, 1]} : vector<8x512xf32> to vector<8x128xf32>
    %137 = math.tanh %136 : vector<8x128xf32>
    %138 = vector.extract_strided_slice %123 {offsets = [0, 384], sizes = [8, 128], strides = [1, 1]} : vector<8x512xf32> to vector<8x128xf32>
    %139 = math.tanh %138 : vector<8x128xf32>
    %cst_46 = arith.constant 5.000000e-01 : f32
    %140 = vector.broadcast %cst_46 : f32 to vector<8x128xf32>
    %141 = arith.mulf %140, %139 : vector<8x128xf32>
    %cst_47 = arith.constant 5.000000e-01 : f32
    %142 = vector.broadcast %cst_47 : f32 to vector<8x128xf32>
    %143 = arith.addf %142, %141 : vector<8x128xf32>
    %144 = arith.mulf %135, %109 : vector<8x128xf32>
    %145 = arith.mulf %129, %137 : vector<8x128xf32>
    %146 = arith.addf %144, %145 : vector<8x128xf32>
    %147 = math.tanh %146 : vector<8x128xf32>
    %148 = arith.mulf %143, %147 : vector<8x128xf32>
    %149 = arith.truncf %148 : vector<8x128xf32> to vector<8x128xbf16>
    %150 = arith.index_cast %c3_i32 : i32 to index
    %c0_48 = arith.constant 0 : index
    %c0_49 = arith.constant 0 : index
    %151 = vector.load %arg4[%150, %c0_48, %c0_49] : memref<8x8x128xbf16, #tpu.memory_space<vmem>>, vector<1x8x128xbf16>
    %152 = vector.shape_cast %151 : vector<1x8x128xbf16> to vector<8x128xbf16>
    %153 = vector.shape_cast %149 : vector<8x128xbf16> to vector<1x8x128xbf16>
    tpu.vector_store %arg4[%150, %c0_48, %c0_49], %153 {strides = array<i32>} : memref<8x8x128xbf16, #tpu.memory_space<vmem>>, vector<1x8x128xbf16>,
    %c4_i32 = arith.constant 4 : i32
    %154 = arith.index_cast %c4_i32 : i32 to index
    %c0_50 = arith.constant 0 : index
    %c0_51 = arith.constant 0 : index
    %155 = vector.load %arg2[%154, %c0_50, %c0_51] : memref<8x8x512xbf16, #tpu.memory_space<vmem>>, vector<1x8x512xbf16>
    %156 = vector.shape_cast %155 : vector<1x8x512xbf16> to vector<8x512xbf16>
    %157 = arith.extf %156 : vector<8x512xbf16> to vector<8x512xf32>
    %158 = arith.truncf %148 : vector<8x128xf32> to vector<8x128xbf16>
    %cst_52 = arith.constant dense<0.000000e+00> : vector<8x512xf32>
    %159 = tpu.matmul %158, %3, %cst_52 {dimension_numbers = #tpu.dot_dimension_numbers<[1], [0], [0], [1], [0, 0, 1, 1], [], []>} : vector<8x128xbf16>, vector<128x512xbf16>, vector<8x512xf32> -> vector<8x512xf32>
    %160 = arith.addf %157, %159 : vector<8x512xf32>
    %161 = vector.extract_strided_slice %160 {offsets = [0, 0], sizes = [8, 128], strides = [1, 1]} : vector<8x512xf32> to vector<8x128xf32>
    %162 = math.tanh %161 : vector<8x128xf32>
    %cst_53 = arith.constant 5.000000e-01 : f32
    %163 = vector.broadcast %cst_53 : f32 to vector<8x128xf32>
    %164 = arith.mulf %163, %162 : vector<8x128xf32>
    %cst_54 = arith.constant 5.000000e-01 : f32
    %165 = vector.broadcast %cst_54 : f32 to vector<8x128xf32>
    %166 = arith.addf %165, %164 : vector<8x128xf32>
    %167 = vector.extract_strided_slice %160 {offsets = [0, 128], sizes = [8, 128], strides = [1, 1]} : vector<8x512xf32> to vector<8x128xf32>
    %168 = math.tanh %167 : vector<8x128xf32>
    %cst_55 = arith.constant 5.000000e-01 : f32
    %169 = vector.broadcast %cst_55 : f32 to vector<8x128xf32>
    %170 = arith.mulf %169, %168 : vector<8x128xf32>
    %cst_56 = arith.constant 5.000000e-01 : f32
    %171 = vector.broadcast %cst_56 : f32 to vector<8x128xf32>
    %172 = arith.addf %171, %170 : vector<8x128xf32>
    %173 = vector.extract_strided_slice %160 {offsets = [0, 256], sizes = [8, 128], strides = [1, 1]} : vector<8x512xf32> to vector<8x128xf32>
    %174 = math.tanh %173 : vector<8x128xf32>
    %175 = vector.extract_strided_slice %160 {offsets = [0, 384], sizes = [8, 128], strides = [1, 1]} : vector<8x512xf32> to vector<8x128xf32>
    %176 = math.tanh %175 : vector<8x128xf32>
    %cst_57 = arith.constant 5.000000e-01 : f32
    %177 = vector.broadcast %cst_57 : f32 to vector<8x128xf32>
    %178 = arith.mulf %177, %176 : vector<8x128xf32>
    %cst_58 = arith.constant 5.000000e-01 : f32
    %179 = vector.broadcast %cst_58 : f32 to vector<8x128xf32>
    %180 = arith.addf %179, %178 : vector<8x128xf32>
    %181 = arith.mulf %172, %146 : vector<8x128xf32>
    %182 = arith.mulf %166, %174 : vector<8x128xf32>
    %183 = arith.addf %181, %182 : vector<8x128xf32>
    %184 = math.tanh %183 : vector<8x128xf32>
    %185 = arith.mulf %180, %184 : vector<8x128xf32>
    %186 = arith.truncf %185 : vector<8x128xf32> to vector<8x128xbf16>
    %187 = arith.index_cast %c4_i32 : i32 to index
    %c0_59 = arith.constant 0 : index
    %c0_60 = arith.constant 0 : index
    %188 = vector.load %arg4[%187, %c0_59, %c0_60] : memref<8x8x128xbf16, #tpu.memory_space<vmem>>, vector<1x8x128xbf16>
    %189 = vector.shape_cast %188 : vector<1x8x128xbf16> to vector<8x128xbf16>
    %190 = vector.shape_cast %186 : vector<8x128xbf16> to vector<1x8x128xbf16>
    tpu.vector_store %arg4[%187, %c0_59, %c0_60], %190 {strides = array<i32>} : memref<8x8x128xbf16, #tpu.memory_space<vmem>>, vector<1x8x128xbf16>,
    %c5_i32 = arith.constant 5 : i32
    %191 = arith.index_cast %c5_i32 : i32 to index
    %c0_61 = arith.constant 0 : index
    %c0_62 = arith.constant 0 : index
    %192 = vector.load %arg2[%191, %c0_61, %c0_62] : memref<8x8x512xbf16, #tpu.memory_space<vmem>>, vector<1x8x512xbf16>
    %193 = vector.shape_cast %192 : vector<1x8x512xbf16> to vector<8x512xbf16>
    %194 = arith.extf %193 : vector<8x512xbf16> to vector<8x512xf32>
    %195 = arith.truncf %185 : vector<8x128xf32> to vector<8x128xbf16>
    %cst_63 = arith.constant dense<0.000000e+00> : vector<8x512xf32>
    %196 = tpu.matmul %195, %3, %cst_63 {dimension_numbers = #tpu.dot_dimension_numbers<[1], [0], [0], [1], [0, 0, 1, 1], [], []>} : vector<8x128xbf16>, vector<128x512xbf16>, vector<8x512xf32> -> vector<8x512xf32>
    %197 = arith.addf %194, %196 : vector<8x512xf32>
    %198 = vector.extract_strided_slice %197 {offsets = [0, 0], sizes = [8, 128], strides = [1, 1]} : vector<8x512xf32> to vector<8x128xf32>
    %199 = math.tanh %198 : vector<8x128xf32>
    %cst_64 = arith.constant 5.000000e-01 : f32
    %200 = vector.broadcast %cst_64 : f32 to vector<8x128xf32>
    %201 = arith.mulf %200, %199 : vector<8x128xf32>
    %cst_65 = arith.constant 5.000000e-01 : f32
    %202 = vector.broadcast %cst_65 : f32 to vector<8x128xf32>
    %203 = arith.addf %202, %201 : vector<8x128xf32>
    %204 = vector.extract_strided_slice %197 {offsets = [0, 128], sizes = [8, 128], strides = [1, 1]} : vector<8x512xf32> to vector<8x128xf32>
    %205 = math.tanh %204 : vector<8x128xf32>
    %cst_66 = arith.constant 5.000000e-01 : f32
    %206 = vector.broadcast %cst_66 : f32 to vector<8x128xf32>
    %207 = arith.mulf %206, %205 : vector<8x128xf32>
    %cst_67 = arith.constant 5.000000e-01 : f32
    %208 = vector.broadcast %cst_67 : f32 to vector<8x128xf32>
    %209 = arith.addf %208, %207 : vector<8x128xf32>
    %210 = vector.extract_strided_slice %197 {offsets = [0, 256], sizes = [8, 128], strides = [1, 1]} : vector<8x512xf32> to vector<8x128xf32>
    %211 = math.tanh %210 : vector<8x128xf32>
    %212 = vector.extract_strided_slice %197 {offsets = [0, 384], sizes = [8, 128], strides = [1, 1]} : vector<8x512xf32> to vector<8x128xf32>
    %213 = math.tanh %212 : vector<8x128xf32>
    %cst_68 = arith.constant 5.000000e-01 : f32
    %214 = vector.broadcast %cst_68 : f32 to vector<8x128xf32>
    %215 = arith.mulf %214, %213 : vector<8x128xf32>
    %cst_69 = arith.constant 5.000000e-01 : f32
    %216 = vector.broadcast %cst_69 : f32 to vector<8x128xf32>
    %217 = arith.addf %216, %215 : vector<8x128xf32>
    %218 = arith.mulf %209, %183 : vector<8x128xf32>
    %219 = arith.mulf %203, %211 : vector<8x128xf32>
    %220 = arith.addf %218, %219 : vector<8x128xf32>
    %221 = math.tanh %220 : vector<8x128xf32>
    %222 = arith.mulf %217, %221 : vector<8x128xf32>
    %223 = arith.truncf %222 : vector<8x128xf32> to vector<8x128xbf16>
    %224 = arith.index_cast %c5_i32 : i32 to index
    %c0_70 = arith.constant 0 : index
    %c0_71 = arith.constant 0 : index
    %225 = vector.load %arg4[%224, %c0_70, %c0_71] : memref<8x8x128xbf16, #tpu.memory_space<vmem>>, vector<1x8x128xbf16>
    %226 = vector.shape_cast %225 : vector<1x8x128xbf16> to vector<8x128xbf16>
    %227 = vector.shape_cast %223 : vector<8x128xbf16> to vector<1x8x128xbf16>
    tpu.vector_store %arg4[%224, %c0_70, %c0_71], %227 {strides = array<i32>} : memref<8x8x128xbf16, #tpu.memory_space<vmem>>, vector<1x8x128xbf16>,
    %c6_i32 = arith.constant 6 : i32
    %228 = arith.index_cast %c6_i32 : i32 to index
    %c0_72 = arith.constant 0 : index
    %c0_73 = arith.constant 0 : index
    %229 = vector.load %arg2[%228, %c0_72, %c0_73] : memref<8x8x512xbf16, #tpu.memory_space<vmem>>, vector<1x8x512xbf16>
    %230 = vector.shape_cast %229 : vector<1x8x512xbf16> to vector<8x512xbf16>
    %231 = arith.extf %230 : vector<8x512xbf16> to vector<8x512xf32>
    %232 = arith.truncf %222 : vector<8x128xf32> to vector<8x128xbf16>
    %cst_74 = arith.constant dense<0.000000e+00> : vector<8x512xf32>
    %233 = tpu.matmul %232, %3, %cst_74 {dimension_numbers = #tpu.dot_dimension_numbers<[1], [0], [0], [1], [0, 0, 1, 1], [], []>} : vector<8x128xbf16>, vector<128x512xbf16>, vector<8x512xf32> -> vector<8x512xf32>
    %234 = arith.addf %231, %233 : vector<8x512xf32>
    %235 = vector.extract_strided_slice %234 {offsets = [0, 0], sizes = [8, 128], strides = [1, 1]} : vector<8x512xf32> to vector<8x128xf32>
    %236 = math.tanh %235 : vector<8x128xf32>
    %cst_75 = arith.constant 5.000000e-01 : f32
    %237 = vector.broadcast %cst_75 : f32 to vector<8x128xf32>
    %238 = arith.mulf %237, %236 : vector<8x128xf32>
    %cst_76 = arith.constant 5.000000e-01 : f32
    %239 = vector.broadcast %cst_76 : f32 to vector<8x128xf32>
    %240 = arith.addf %239, %238 : vector<8x128xf32>
    %241 = vector.extract_strided_slice %234 {offsets = [0, 128], sizes = [8, 128], strides = [1, 1]} : vector<8x512xf32> to vector<8x128xf32>
    %242 = math.tanh %241 : vector<8x128xf32>
    %cst_77 = arith.constant 5.000000e-01 : f32
    %243 = vector.broadcast %cst_77 : f32 to vector<8x128xf32>
    %244 = arith.mulf %243, %242 : vector<8x128xf32>
    %cst_78 = arith.constant 5.000000e-01 : f32
    %245 = vector.broadcast %cst_78 : f32 to vector<8x128xf32>
    %246 = arith.addf %245, %244 : vector<8x128xf32>
    %247 = vector.extract_strided_slice %234 {offsets = [0, 256], sizes = [8, 128], strides = [1, 1]} : vector<8x512xf32> to vector<8x128xf32>
    %248 = math.tanh %247 : vector<8x128xf32>
    %249 = vector.extract_strided_slice %234 {offsets = [0, 384], sizes = [8, 128], strides = [1, 1]} : vector<8x512xf32> to vector<8x128xf32>
    %250 = math.tanh %249 : vector<8x128xf32>
    %cst_79 = arith.constant 5.000000e-01 : f32
    %251 = vector.broadcast %cst_79 : f32 to vector<8x128xf32>
    %252 = arith.mulf %251, %250 : vector<8x128xf32>
    %cst_80 = arith.constant 5.000000e-01 : f32
    %253 = vector.broadcast %cst_80 : f32 to vector<8x128xf32>
    %254 = arith.addf %253, %252 : vector<8x128xf32>
    %255 = arith.mulf %246, %220 : vector<8x128xf32>
    %256 = arith.mulf %240, %248 : vector<8x128xf32>
    %257 = arith.addf %255, %256 : vector<8x128xf32>
    %258 = math.tanh %257 : vector<8x128xf32>
    %259 = arith.mulf %254, %258 : vector<8x128xf32>
    %260 = arith.truncf %259 : vector<8x128xf32> to vector<8x128xbf16>
    %261 = arith.index_cast %c6_i32 : i32 to index
    %c0_81 = arith.constant 0 : index
    %c0_82 = arith.constant 0 : index
    %262 = vector.load %arg4[%261, %c0_81, %c0_82] : memref<8x8x128xbf16, #tpu.memory_space<vmem>>, vector<1x8x128xbf16>
    %263 = vector.shape_cast %262 : vector<1x8x128xbf16> to vector<8x128xbf16>
    %264 = vector.shape_cast %260 : vector<8x128xbf16> to vector<1x8x128xbf16>
    tpu.vector_store %arg4[%261, %c0_81, %c0_82], %264 {strides = array<i32>} : memref<8x8x128xbf16, #tpu.memory_space<vmem>>, vector<1x8x128xbf16>,
    %c7_i32 = arith.constant 7 : i32
    %265 = arith.index_cast %c7_i32 : i32 to index
    %c0_83 = arith.constant 0 : index
    %c0_84 = arith.constant 0 : index
    %266 = vector.load %arg2[%265, %c0_83, %c0_84] : memref<8x8x512xbf16, #tpu.memory_space<vmem>>, vector<1x8x512xbf16>
    %267 = vector.shape_cast %266 : vector<1x8x512xbf16> to vector<8x512xbf16>
    %268 = arith.extf %267 : vector<8x512xbf16> to vector<8x512xf32>
    %269 = arith.truncf %259 : vector<8x128xf32> to vector<8x128xbf16>
    %cst_85 = arith.constant dense<0.000000e+00> : vector<8x512xf32>
    %270 = tpu.matmul %269, %3, %cst_85 {dimension_numbers = #tpu.dot_dimension_numbers<[1], [0], [0], [1], [0, 0, 1, 1], [], []>} : vector<8x128xbf16>, vector<128x512xbf16>, vector<8x512xf32> -> vector<8x512xf32>
    %271 = arith.addf %268, %270 : vector<8x512xf32>
    %272 = vector.extract_strided_slice %271 {offsets = [0, 0], sizes = [8, 128], strides = [1, 1]} : vector<8x512xf32> to vector<8x128xf32>
    %273 = math.tanh %272 : vector<8x128xf32>
    %cst_86 = arith.constant 5.000000e-01 : f32
    %274 = vector.broadcast %cst_86 : f32 to vector<8x128xf32>
    %275 = arith.mulf %274, %273 : vector<8x128xf32>
    %cst_87 = arith.constant 5.000000e-01 : f32
    %276 = vector.broadcast %cst_87 : f32 to vector<8x128xf32>
    %277 = arith.addf %276, %275 : vector<8x128xf32>
    %278 = vector.extract_strided_slice %271 {offsets = [0, 128], sizes = [8, 128], strides = [1, 1]} : vector<8x512xf32> to vector<8x128xf32>
    %279 = math.tanh %278 : vector<8x128xf32>
    %cst_88 = arith.constant 5.000000e-01 : f32
    %280 = vector.broadcast %cst_88 : f32 to vector<8x128xf32>
    %281 = arith.mulf %280, %279 : vector<8x128xf32>
    %cst_89 = arith.constant 5.000000e-01 : f32
    %282 = vector.broadcast %cst_89 : f32 to vector<8x128xf32>
    %283 = arith.addf %282, %281 : vector<8x128xf32>
    %284 = vector.extract_strided_slice %271 {offsets = [0, 256], sizes = [8, 128], strides = [1, 1]} : vector<8x512xf32> to vector<8x128xf32>
    %285 = math.tanh %284 : vector<8x128xf32>
    %286 = vector.extract_strided_slice %271 {offsets = [0, 384], sizes = [8, 128], strides = [1, 1]} : vector<8x512xf32> to vector<8x128xf32>
    %287 = math.tanh %286 : vector<8x128xf32>
    %cst_90 = arith.constant 5.000000e-01 : f32
    %288 = vector.broadcast %cst_90 : f32 to vector<8x128xf32>
    %289 = arith.mulf %288, %287 : vector<8x128xf32>
    %cst_91 = arith.constant 5.000000e-01 : f32
    %290 = vector.broadcast %cst_91 : f32 to vector<8x128xf32>
    %291 = arith.addf %290, %289 : vector<8x128xf32>
    %292 = arith.mulf %283, %257 : vector<8x128xf32>
    %293 = arith.mulf %277, %285 : vector<8x128xf32>
    %294 = arith.addf %292, %293 : vector<8x128xf32>
    %295 = math.tanh %294 : vector<8x128xf32>
    %296 = arith.mulf %291, %295 : vector<8x128xf32>
    %297 = arith.truncf %296 : vector<8x128xf32> to vector<8x128xbf16>
    %298 = arith.index_cast %c7_i32 : i32 to index
    %c0_92 = arith.constant 0 : index
    %c0_93 = arith.constant 0 : index
    %299 = vector.load %arg4[%298, %c0_92, %c0_93] : memref<8x8x128xbf16, #tpu.memory_space<vmem>>, vector<1x8x128xbf16>
    %300 = vector.shape_cast %299 : vector<1x8x128xbf16> to vector<8x128xbf16>
    %301 = vector.shape_cast %297 : vector<8x128xbf16> to vector<1x8x128xbf16>
    tpu.vector_store %arg4[%298, %c0_92, %c0_93], %301 {strides = array<i32>} : memref<8x8x128xbf16, #tpu.memory_space<vmem>>, vector<1x8x128xbf16>,
    %c8_i32 = arith.constant 8 : i32
    %c0_94 = arith.constant 0 : index
    %c0_95 = arith.constant 0 : index
    %302 = vector.load %arg5[%c0_94, %c0_95] : memref<8x128xf32, #tpu.memory_space<vmem>>, vector<8x128xf32>
    tpu.vector_store %arg5[%c0_94, %c0_95], %296 {strides = array<i32>} : memref<8x128xf32, #tpu.memory_space<vmem>>, vector<8x128xf32>,
    %c0_96 = arith.constant 0 : index
    %c0_97 = arith.constant 0 : index
    %303 = vector.load %arg6[%c0_96, %c0_97] : memref<8x128xf32, #tpu.memory_space<vmem>>, vector<8x128xf32>
    tpu.vector_store %arg6[%c0_96, %c0_97], %294 {strides = array<i32>} : memref<8x128xf32, #tpu.memory_space<vmem>>, vector<8x128xf32>,
    return
  }
  func.func @transform_0(%arg0: i32, %arg1: i32) -> (i32, i32, i32) {
    %c0_i32 = arith.constant 0 : i32
    %c0_i32_0 = arith.constant 0 : i32
    return %arg1, %arg0, %c0_i32 : i32, i32, i32
  }
  func.func @transform_1(%arg0: i32, %arg1: i32) -> (i32, i32) {
    %c0_i32 = arith.constant 0 : i32
    %c0_i32_0 = arith.constant 0 : i32
    %c0_i32_1 = arith.constant 0 : i32
    return %c0_i32, %c0_i32_0 : i32, i32
  }
  func.func @transform_2(%arg0: i32, %arg1: i32) -> (i32, i32, i32) {
    %c0_i32 = arith.constant 0 : i32
    %c0_i32_0 = arith.constant 0 : i32
    return %arg1, %arg0, %c0_i32 : i32, i32, i32
  }
  func.func @transform_3(%arg0: i32, %arg1: i32) -> (i32, i32) {
    %c0_i32 = arith.constant 0 : i32
    %c0_i32_0 = arith.constant 0 : i32
    return %arg0, %c0_i32 : i32, i32
  }
  func.func @transform_4(%arg0: i32, %arg1: i32) -> (i32, i32) {
    %c0_i32 = arith.constant 0 : i32
    %c0_i32_0 = arith.constant 0 : i32
    return %arg0, %c0_i32 : i32, i32
  }
}

</mosaic_0001>

<bundles_post_ra>
// kernel: tpu_custom_call.1
= control target key start
LH: loop header
LB: loop body
LE: loop exit
PB: predicated region body
PF: predicated region fallthrough
CT: control target
= control target key end

     0   :  { %10 = vsyncpa [#allocation3], 0  ;;  %s1938_s0 = inlined_call_operand.hbm [shape: bf16[8,8,512], index: 0, kind: input, shape index: {}]   ;;  %s1939_s1 = inlined_call_operand.hbm [shape: bf16[128,512], index: 1, kind: input, shape index: {}]   ;;  %s1940_s2 = inlined_call_operand.hbm [shape: bf16[8,8,128], index: 2, kind: output, shape index: {0}]   ;;  %s1941_s3 = inlined_call_operand.hbm [shape: f32[8,128], index: 3, kind: output, shape index: {1}]   ;;  %s1942_s4 = inlined_call_operand.hbm [shape: f32[8,128], index: 4, kind: output, shape index: {2}]  }
   0x1   :  { %11 = vsyncpa [#allocation6], 0 }
   0x2   :  { %12 = vsyncpa [#allocation4], 0 }
   0x3   :  { %13 = vsyncpa [#allocation9], 0  ;;  %s1489_s15 = smov [#allocation2]   ;;  %s1371_s19 = scalar_lea.hbm %s1938_s0, 2048 }
   0x4   :  { %s19_s16 = sshll.u32 %s1489_s15, 4  ;;  %p1372_p0 = scmp.ne.s32.totalorder %s1938_s0, %s1371_s19  ;;  %s20_s16 = int_to_ptr.vmem [resolvable:$true] %s19_s16 }
   0x5   :  { %p1375_p1 = scmp.lt.u32.totalorder %s1371_s19, %s1938_s0 }
   0x7   :  { %p1377_p2 = pnand %p1375_p1, %p1372_p0 }
   0x9   :  { %1380 = shalt.err (!%p1377_p2)
}
   0xa   :  { %s1381_s24 = scalar_lea.vmem %s20_s16, 2048  ;;  %p1386_p4 = scmp.lt.s32.totalorder %s20_s16, %s20_s16 }
   0xb   :  { %p1382_p3 = scmp.ne.s32.totalorder %s20_s16, %s1381_s24  ;;  %p1387_p5 = scmp.lt.s32.totalorder %s1381_s24, %s1381_s24 }
   0xd   :  { %p1388_p6 = por %p1387_p5, %p1386_p4 }
   0xf   :  { %p1389_p7 = pnand %p1388_p6, %p1382_p3 }
  0x11   :  { %1392 = shalt.err (!%p1389_p7)
}
  0x12   :  { %s1490_s25 = smov 256   ;;  %s1491_s26 = smov 16  }
  0x13   :  { %25 = dma.hbm_to_vmem [thread:$0]  %s1938_s0, 2048, %s20_s16, [#allocation3], %s1490_s25, %s1490_s25, %s1491_s26  }
  0x14   :  { %s1492_s29 = smov [#allocation5]   ;;  %s1393_s7 = scalar_lea.hbm %s1939_s1, 4096 }
  0x15   :  { %s31_s30 = sshll.u32 %s1492_s29, 4  ;;  %p1394_p8 = scmp.ne.s32.totalorder %s1939_s1, %s1393_s7  ;;  %s32_s30 = int_to_ptr.vmem [resolvable:$true] %s31_s30 }
  0x16   :  { %p1397_p9 = scmp.lt.u32.totalorder %s1393_s7, %s1939_s1 }
  0x18   :  { %p1399_p10 = pnand %p1397_p9, %p1394_p8 }
  0x1a   :  { %1402 = shalt.err (!%p1399_p10)
}
  0x1b   :  { %s1403_s12 = scalar_lea.vmem %s32_s30, 4096  ;;  %p1408_p12 = scmp.lt.s32.totalorder %s32_s30, %s32_s30 }
  0x1c   :  { %p1404_p11 = scmp.ne.s32.totalorder %s32_s30, %s1403_s12  ;;  %p1409_p13 = scmp.lt.s32.totalorder %s1403_s12, %s1403_s12 }
  0x1e   :  { %p1410_p0 = por %p1409_p13, %p1408_p12 }
  0x20   :  { %p1411_p1 = pnand %p1410_p0, %p1404_p11 }
  0x22   :  { %1414 = shalt.err (!%p1411_p1)
}
  0x23   :  { %37 = dma.hbm_to_vmem [thread:$0]  %s1939_s1, 4096, %s32_s30, [#allocation6], %s1490_s25, %s1490_s25, %s1491_s26  }
  0x24   :  { %1481 = dma.done.wait [#allocation3], 2048  }
  0x25   :  { %1482 = vsyncadd [#allocation3], 4294965248 }
  0x26   :  { %1483 = dma.done.wait [#allocation6], 4096  }
  0x27   :  { %1484 = vsyncadd [#allocation6], 4294963200  ;;  %v1493_v0 = vmov 0   ;;  %v1551_v1 = vld [vmem:[#allocation5 + $0x4] ss:$16 sps:$4 sm:$0xff]   ;;  %v1494_v33 = vmov 0.0|0.0  }
  0x28   :  { %284 = vmatprep.mubr.bf16.mxu0 %v1493_v0  ;;  %325 = vmatprep.mubr.bf16.mxu1 %v1493_v0  ;;  %v1553_v2 = vld [vmem:[#allocation5] ss:$16 sps:$4 sm:$0xff]   ;;  %v1556_v3 = vld [vmem:[#allocation5 + $0xc] ss:$16 sps:$4 sm:$0xff]   ;;  %v1558_v4 = vld [vmem:[#allocation5 + $0x8] ss:$16 sps:$4 sm:$0xff]  }
  0x29   :  { %252 = vmatprep.subr.bf16.mxu0 %v1551_v1  ;;  %v1561_v5 = vld [vmem:[#allocation5 + $0x24] ss:$16 sps:$4 sm:$0xff]   ;;  %v1563_v6 = vld [vmem:[#allocation5 + $0x20] ss:$16 sps:$4 sm:$0xff]   ;;  %293 = vmatprep.subr.bf16.mxu1 %v1556_v3  ;;  %v1566_v7 = vld [vmem:[#allocation5 + $0x2c] ss:$16 sps:$4 sm:$0xff]  }
  0x2a   :  { %253 = vmatpush1.bf16.msra.mxu0 %v1553_v2  ;;  %294 = vmatpush1.bf16.msra.mxu1 %v1558_v4  ;;  %v1570_v8 = vld [vmem:[#allocation5 + $0x28] ss:$16 sps:$4 sm:$0xff]   ;;  %v1573_v9 = vld [vmem:[#allocation5 + $0x44] ss:$16 sps:$4 sm:$0xff]   ;;  %v1576_v10 = vld [vmem:[#allocation5 + $0x40] ss:$16 sps:$4 sm:$0xff]  }
  0x2b   :  { %254 = vmatprep.subr.bf16.mxu0 %v1561_v5  ;;  %295 = vmatprep.subr.bf16.mxu1 %v1566_v7  ;;  %v1578_v11 = vld [vmem:[#allocation5 + $0x4c] ss:$16 sps:$4 sm:$0xff]   ;;  %v1581_v12 = vld [vmem:[#allocation5 + $0x64] ss:$16 sps:$4 sm:$0xff]   ;;  %v1584_v13 = vld [vmem:[#allocation5 + $0x48] ss:$16 sps:$4 sm:$0xff]  }
  0x2c   :  { %v1587_v14 = vld [vmem:[#allocation5 + $0x6c] ss:$16 sps:$4 sm:$0xff]   ;;  %v1590_v15 = vld [vmem:[#allocation5 + $0x60] ss:$16 sps:$4 sm:$0xff]   ;;  %v1593_v16 = vld [vmem:[#allocation5 + $0x84] ss:$16 sps:$4 sm:$0xff]  }
  0x2d   :  { %v1596_v17 = vld [vmem:[#allocation5 + $0x68] ss:$16 sps:$4 sm:$0xff]   ;;  %v1599_v18 = vld [vmem:[#allocation5 + $0x8c] ss:$16 sps:$4 sm:$0xff]   ;;  %v1602_v19 = vld [vmem:[#allocation5 + $0x80] ss:$16 sps:$4 sm:$0xff]  }
  0x2e   :  { %255 = vmatpush1.bf16.msra.mxu0 %v1563_v6  ;;  %296 = vmatpush1.bf16.msra.mxu1 %v1570_v8  ;;  %v1605_v20 = vld [vmem:[#allocation5 + $0xa4] ss:$16 sps:$4 sm:$0xff]   ;;  %v1608_v21 = vld [vmem:[#allocation5 + $0x88] ss:$16 sps:$4 sm:$0xff]   ;;  %v1611_v22 = vld [vmem:[#allocation5 + $0xac] ss:$16 sps:$4 sm:$0xff]  }
  0x2f   :  { %256 = vmatprep.subr.bf16.mxu0 %v1573_v9  ;;  %297 = vmatprep.subr.bf16.mxu1 %v1578_v11  ;;  %v1614_v23 = vld [vmem:[#allocation5 + $0xa0] ss:$16 sps:$4 sm:$0xff]   ;;  %v1617_v24 = vld [vmem:[#allocation5 + $0xc4] ss:$16 sps:$4 sm:$0xff]   ;;  %v1620_v25 = vld [vmem:[#allocation5 + $0xa8] ss:$16 sps:$4 sm:$0xff]  }
  0x30   :  { %v1623_v26 = vld [vmem:[#allocation5 + $0xcc] ss:$16 sps:$4 sm:$0xff]   ;;  %v1626_v27 = vld [vmem:[#allocation5 + $0xc0] ss:$16 sps:$4 sm:$0xff]   ;;  %v1629_v28 = vld [vmem:[#allocation5 + $0xe4] ss:$16 sps:$4 sm:$0xff]  }
  0x31   :  { %v1632_v29 = vld [vmem:[#allocation5 + $0xc8] ss:$16 sps:$4 sm:$0xff]   ;;  %v1635_v30 = vld [vmem:[#allocation5 + $0xec] ss:$16 sps:$4 sm:$0xff]   ;;  %v1638_v31 = vld [vmem:[#allocation5 + $0xe0] ss:$16 sps:$4 sm:$0xff]  }
  0x32   :  { %257 = vmatpush1.bf16.msra.mxu0 %v1576_v10  ;;  %298 = vmatpush1.bf16.msra.mxu1 %v1584_v13  ;;  %v1642_v32 = vld [vmem:[#allocation5 + $0xe8] ss:$16 sps:$4 sm:$0xff]   ;;  %v85_v34 = vld [vmem:[#allocation2] sm:$0xff]  ;;  %s1495_s1 = smov [#allocation8]   ;;  %s1496_s15 = smov [#allocation7]  }
  0x33   :  { %258 = vmatprep.subr.bf16.mxu0 %v1581_v12  ;;  %299 = vmatprep.subr.bf16.mxu1 %v1587_v14  ;;  %v86_v35 = vld [vmem:[#allocation2 + $0x8] sm:$0xff]  ;;  %v87_v36 = vunpack.c.l.bf16 %v85_v34  ;;  %v88_v37 = vunpack.c.h.bf16 %v85_v34  ;;  %s1152_s14 = sshll.u32 %s1495_s1, 4  ;;  %s1139_s16 = sshll.u32 %s1496_s15, 4  ;;  %s1153_s14 = int_to_ptr.vmem [resolvable:$true] %s1152_s14  ;;  %s1888_s16 = int_to_ptr.vmem [resolvable:$true] %s1139_s16 }
  0x34   :  { %v89_v38 = vunpack.c.l.bf16 %v86_v35  ;;  %v90_v50 = vunpack.c.h.bf16 %v86_v35  ;;  %s1497_s17 = smov [#allocation10]   ;;  %s1415_s19 = scalar_lea.vmem %s1153_s14, 128 }
  0x35   :  { %s1162_s18 = sshll.u32 %s1497_s17, 4  ;;  %p1416_p2 = scmp.ne.s32.totalorder %s1153_s14, %s1415_s19  ;;  %s1890_s18 = int_to_ptr.vmem [resolvable:$true] %s1162_s18 }
  0x36   :  { %259 = vmatpush1.bf16.msra.mxu0 %v1590_v15  ;;  %300 = vmatpush1.bf16.msra.mxu1 %v1596_v17  ;;  %p1420_p3 = scmp.lt.s32.totalorder %s1153_s14, %s1153_s14  ;;  %p1421_p4 = scmp.lt.s32.totalorder %s1415_s19, %s1415_s19 }
  0x37   :  { %260 = vmatprep.subr.bf16.mxu0 %v1593_v16  ;;  %301 = vmatprep.subr.bf16.mxu1 %v1599_v18 }
  0x38   :  { %p1422_p5 = por %p1421_p4, %p1420_p3 }
  0x3a   :  { %261 = vmatpush1.bf16.msra.mxu0 %v1602_v19  ;;  %302 = vmatpush1.bf16.msra.mxu1 %v1608_v21  ;;  %p1423_p6 = pnand %p1422_p5, %p1416_p2 }
  0x3b   :  { %262 = vmatprep.subr.bf16.mxu0 %v1605_v20  ;;  %303 = vmatprep.subr.bf16.mxu1 %v1611_v22 }
  0x3e   :  { %263 = vmatpush1.bf16.msra.mxu0 %v1614_v23  ;;  %304 = vmatpush1.bf16.msra.mxu1 %v1620_v25 }
  0x3f   :  { %264 = vmatprep.subr.bf16.mxu0 %v1617_v24  ;;  %305 = vmatprep.subr.bf16.mxu1 %v1623_v26 }
  0x42   :  { %265 = vmatpush1.bf16.msra.mxu0 %v1626_v27  ;;  %306 = vmatpush1.bf16.msra.mxu1 %v1632_v29 }
  0x43   :  { %266 = vmatprep.subr.bf16.mxu0 %v1629_v28  ;;  %307 = vmatprep.subr.bf16.mxu1 %v1635_v30 }
  0x46   :  { %267 = vmatpush1.bf16.msra.mxu0 %v1638_v31  ;;  %308 = vmatpush1.bf16.msra.mxu1 %v1642_v32 }
  0x47   :  { %362 = vmatprep.subr.bf16.mxu0 %v1551_v1  ;;  %403 = vmatprep.subr.bf16.mxu1 %v1556_v3 }
  0x49   :  { %285 = vmatmul.mubr.bf16.vlgmr.msra.gmra.mrb[0].mxu0 %v1494_v33  ;;  %326 = vmatmul.mubr.bf16.vlgmr.msra.gmra.mrb[0].mxu1 %v1494_v33 }
  0x4a   :  { %363 = vmatpush1.bf16.msra.mxu0 %v1553_v2  ;;  %394 = vmatprep.mubr.bf16.mxu0 %v1493_v0 }
  0x4b   :  { %364 = vmatprep.subr.bf16.mxu0 %v1561_v5  ;;  %404 = vmatpush1.bf16.msra.mxu1 %v1558_v4 }
  0x4c   :  { %435 = vmatprep.mubr.bf16.mxu1 %v1493_v0  ;;  %405 = vmatprep.subr.bf16.mxu1 %v1566_v7 }
  0x4e   :  { %365 = vmatpush1.bf16.msra.mxu0 %v1563_v6 }
  0x4f   :  { %366 = vmatprep.subr.bf16.mxu0 %v1573_v9  ;;  %406 = vmatpush1.bf16.msra.mxu1 %v1570_v8 }
  0x50   :  { %407 = vmatprep.subr.bf16.mxu1 %v1578_v11 }
  0x52   :  { %367 = vmatpush1.bf16.msra.mxu0 %v1576_v10 }
  0x53   :  { %368 = vmatprep.subr.bf16.mxu0 %v1581_v12  ;;  %408 = vmatpush1.bf16.msra.mxu1 %v1584_v13 }
  0x54   :  { %409 = vmatprep.subr.bf16.mxu1 %v1587_v14 }
  0x56   :  { %369 = vmatpush1.bf16.msra.mxu0 %v1590_v15 }
  0x57   :  { %370 = vmatprep.subr.bf16.mxu0 %v1593_v16  ;;  %410 = vmatpush1.bf16.msra.mxu1 %v1596_v17 }
  0x58   :  { %411 = vmatprep.subr.bf16.mxu1 %v1599_v18 }
  0x5a   :  { %371 = vmatpush1.bf16.msra.mxu0 %v1602_v19 }
  0x5b   :  { %372 = vmatprep.subr.bf16.mxu0 %v1605_v20  ;;  %412 = vmatpush1.bf16.msra.mxu1 %v1608_v21 }
  0x5c   :  { %413 = vmatprep.subr.bf16.mxu1 %v1611_v22 }
  0x5e   :  { %373 = vmatpush1.bf16.msra.mxu0 %v1614_v23 }
  0x5f   :  { %374 = vmatprep.subr.bf16.mxu0 %v1617_v24  ;;  %414 = vmatpush1.bf16.msra.mxu1 %v1620_v25 }
  0x60   :  { %415 = vmatprep.subr.bf16.mxu1 %v1623_v26 }
  0x62   :  { %375 = vmatpush1.bf16.msra.mxu0 %v1626_v27 }
  0x63   :  { %376 = vmatprep.subr.bf16.mxu0 %v1629_v28  ;;  %416 = vmatpush1.bf16.msra.mxu1 %v1632_v29 }
  0x64   :  { %417 = vmatprep.subr.bf16.mxu1 %v1635_v30 }
  0x66   :  { %377 = vmatpush1.bf16.msra.mxu0 %v1638_v31 }
  0x67   :  { %473 = vmatprep.subr.bf16.mxu0 %v1551_v1  ;;  %418 = vmatpush1.bf16.msra.mxu1 %v1642_v32 }
  0x68   :  { %514 = vmatprep.subr.bf16.mxu1 %v1556_v3 }
 0x11c   :  { %v286_v39 = vpop.f32.mrb[0].mxu0  ;;  %v327_v44 = vpop.f32.mrb[0].mxu1 }
 0x11d   :  { %v334_v40 = vadd.f32 %v286_v39, %v87_v36  ;;  %v288_v41 = vpop.f32.mrb[1].mxu0  ;;  %v336_v45 = vadd.f32 %v327_v44, %v89_v38  ;;  %v329_v47 = vpop.f32.mrb[1].mxu1  ;;  %v357_v38 = vld [vmem:[#allocation2 + $0x18] sm:$0xff] }
 0x11e   :  { %v335_v42 = vadd.f32 %v288_v41, %v88_v37  ;;  %v290_v43 = vpop.f32.mrb[2].mxu0  ;;  %v331_v48 = vpop.f32.mrb[2].mxu1  ;;  %v337_v51 = vadd.f32 %v329_v47, %v90_v50  ;;  %v356_v37 = vld [vmem:[#allocation2 + $0x10] sm:$0xff]  ;;  %v360_v41 = vunpack.c.l.bf16 %v357_v38 }
 0x11f   :  { %1270 = vtanh.f32 %v334_v40  ;;  %v291_v46 = vpop.f32.mrb[3].mxu0  ;;  %v332_v49 = vpop.f32.mrb[3].mxu1  ;;  %v358_v39 = vunpack.c.l.bf16 %v356_v37  ;;  %v359_v40 = vunpack.c.h.bf16 %v356_v37 }
 0x120   :  { %1272 = vtanh.f32 %v335_v42 }
 0x121   :  { %1274 = vtanh.f32 %v336_v45 }
 0x122   :  { %1276 = vtanh.f32 %v337_v51 }
 0x129   :  { %v1271_v52 = vpop.eup %1270 }
 0x12a   :  { %v1273_v53 = vpop.eup %1272  ;;  %v339_v54 = vmul.f32 0.5, %v1271_v52 }
 0x12b   :  { %v1275_v55 = vpop.eup %1274  ;;  %v342_v56 = vmul.f32 0.5, %v1273_v53  ;;  %v361_v53 = vunpack.c.h.bf16 %v357_v38 }
 0x12c   :  { %v340_v57 = vadd.f32 0.5, %v339_v54  ;;  %v1277_v62 = vpop.eup %1276 }
 0x12d   :  { %v343_v58 = vadd.f32 0.5, %v342_v56  ;;  %v346_v63 = vmul.f32 0.5, %v1277_v62 }
 0x12e   :  { %v349_v59 = vmul.f32 %v1275_v55, %v340_v57 }
 0x12f   :  { %v348_v60 = vmul.f32 0.0, %v343_v58  ;;  %v347_v33 = vadd.f32 0.5, %v346_v63 }
 0x131   :  { %v1683_v61 = vadd.f32 %v349_v59, %v348_v60 }
 0x133   :  { %1278 = vtanh.f32 %v1683_v61 }
 0x13d   :  { %v1279_v34 = vpop.eup %1278 }
 0x13e   :  { %v352_v35 = vmul.f32 %v1279_v34, %v347_v33 }
 0x140   :  { %v353_v36 = vpack.c.bf16 %v352_v35, %v352_v35 }
 0x142   :  { %354 = vst [vmem:[#allocation7] sm:$0xf] %v353_v36  ;;  %395 = vmatmul.mubr.bf16.vlgmr.msra.gmra.mrb[4].mxu0 %v353_v36  ;;  %436 = vmatmul.mubr.bf16.vlgmr.msra.gmra.mrb[4].mxu1 %v353_v36 }
 0x143   :  { %474 = vmatpush1.bf16.msra.mxu0 %v1553_v2  ;;  %515 = vmatpush1.bf16.msra.mxu1 %v1558_v4 }
 0x144   :  { %475 = vmatprep.subr.bf16.mxu0 %v1561_v5  ;;  %516 = vmatprep.subr.bf16.mxu1 %v1566_v7 }
 0x145   :  { %505 = vmatprep.mubr.bf16.mxu0 %v1493_v0  ;;  %546 = vmatprep.mubr.bf16.mxu1 %v1493_v0 }
 0x147   :  { %476 = vmatpush1.bf16.msra.mxu0 %v1563_v6  ;;  %517 = vmatpush1.bf16.msra.mxu1 %v1570_v8 }
 0x148   :  { %477 = vmatprep.subr.bf16.mxu0 %v1573_v9  ;;  %518 = vmatprep.subr.bf16.mxu1 %v1578_v11 }
 0x14b   :  { %478 = vmatpush1.bf16.msra.mxu0 %v1576_v10  ;;  %519 = vmatpush1.bf16.msra.mxu1 %v1584_v13 }
 0x14c   :  { %479 = vmatprep.subr.bf16.mxu0 %v1581_v12  ;;  %520 = vmatprep.subr.bf16.mxu1 %v1587_v14 }
 0x14f   :  { %480 = vmatpush1.bf16.msra.mxu0 %v1590_v15  ;;  %521 = vmatpush1.bf16.msra.mxu1 %v1596_v17 }
 0x150   :  { %481 = vmatprep.subr.bf16.mxu0 %v1593_v16  ;;  %522 = vmatprep.subr.bf16.mxu1 %v1599_v18 }
 0x153   :  { %482 = vmatpush1.bf16.msra.mxu0 %v1602_v19  ;;  %523 = vmatpush1.bf16.msra.mxu1 %v1608_v21 }
 0x154   :  { %483 = vmatprep.subr.bf16.mxu0 %v1605_v20  ;;  %524 = vmatprep.subr.bf16.mxu1 %v1611_v22 }
 0x157   :  { %484 = vmatpush1.bf16.msra.mxu0 %v1614_v23  ;;  %525 = vmatpush1.bf16.msra.mxu1 %v1620_v25 }
 0x158   :  { %485 = vmatprep.subr.bf16.mxu0 %v1617_v24  ;;  %526 = vmatprep.subr.bf16.mxu1 %v1623_v26 }
 0x15b   :  { %486 = vmatpush1.bf16.msra.mxu0 %v1626_v27  ;;  %527 = vmatpush1.bf16.msra.mxu1 %v1632_v29 }
 0x15c   :  { %487 = vmatprep.subr.bf16.mxu0 %v1629_v28  ;;  %528 = vmatprep.subr.bf16.mxu1 %v1635_v30 }
 0x15f   :  { %488 = vmatpush1.bf16.msra.mxu0 %v1638_v31  ;;  %529 = vmatpush1.bf16.msra.mxu1 %v1642_v32 }
 0x160   :  { %584 = vmatprep.subr.bf16.mxu0 %v1551_v1  ;;  %625 = vmatprep.subr.bf16.mxu1 %v1556_v3 }
 0x215   :  { %v396_v42 = vpop.f32.mrb[4].mxu0  ;;  %v437_v43 = vpop.f32.mrb[4].mxu1 }
 0x216   :  { %v444_v44 = vadd.f32 %v396_v42, %v358_v39  ;;  %v398_v45 = vpop.f32.mrb[5].mxu0  ;;  %v439_v46 = vpop.f32.mrb[5].mxu1  ;;  %v446_v50 = vadd.f32 %v437_v43, %v360_v41  ;;  %v468_v41 = vld [vmem:[#allocation2 + $0x28] sm:$0xff] }
 0x217   :  { %v445_v47 = vadd.f32 %v398_v45, %v359_v40  ;;  %v400_v48 = vpop.f32.mrb[6].mxu0  ;;  %v441_v49 = vpop.f32.mrb[6].mxu1  ;;  %v447_v54 = vadd.f32 %v439_v46, %v361_v53 }
 0x218   :  { %1280 = vtanh.f32 %v444_v44  ;;  %v401_v51 = vpop.f32.mrb[7].mxu0  ;;  %v442_v52 = vpop.f32.mrb[7].mxu1  ;;  %v471_v44 = vunpack.c.l.bf16 %v468_v41 }
 0x219   :  { %1282 = vtanh.f32 %v445_v47 }
 0x21a   :  { %1284 = vtanh.f32 %v446_v50 }
 0x21b   :  { %1286 = vtanh.f32 %v447_v54 }
 0x222   :  { %v1281_v55 = vpop.eup %1280 }
 0x223   :  { %v449_v56 = vmul.f32 0.5, %v1281_v55  ;;  %v1283_v57 = vpop.eup %1282 }
 0x224   :  { %v452_v59 = vmul.f32 0.5, %v1283_v57  ;;  %v1285_v60 = vpop.eup %1284 }
 0x225   :  { %v450_v58 = vadd.f32 0.5, %v449_v56  ;;  %v1287_v35 = vpop.eup %1286  ;;  %v472_v56 = vunpack.c.h.bf16 %v468_v41 }
 0x226   :  { %v453_v62 = vadd.f32 0.5, %v452_v59  ;;  %v456_v36 = vmul.f32 0.5, %v1287_v35 }
 0x227   :  { %v459_v63 = vmul.f32 %v1285_v60, %v450_v58 }
 0x228   :  { %v458_v33 = vmul.f32 %v453_v62, %v1683_v61  ;;  %v457_v37 = vadd.f32 0.5, %v456_v36  ;;  %v467_v61 = vld [vmem:[#allocation2 + $0x20] sm:$0xff] }
 0x229   :  { %v469_v42 = vunpack.c.l.bf16 %v467_v61  ;;  %v470_v43 = vunpack.c.h.bf16 %v467_v61 }
 0x22a   :  { %v1721_v34 = vadd.f32 %v459_v63, %v458_v33 }
 0x22c   :  { %1288 = vtanh.f32 %v1721_v34 }
 0x236   :  { %v1289_v38 = vpop.eup %1288 }
 0x237   :  { %v462_v39 = vmul.f32 %v1289_v38, %v457_v37 }
 0x239   :  { %v463_v40 = vpack.c.bf16 %v462_v39, %v462_v39 }
 0x23b   :  { %465 = vst [vmem:[#allocation7 + $0x4] sm:$0xf] %v463_v40  ;;  %506 = vmatmul.mubr.bf16.vlgmr.msra.gmra.mrb[8].mxu0 %v463_v40  ;;  %547 = vmatmul.mubr.bf16.vlgmr.msra.gmra.mrb[8].mxu1 %v463_v40 }
 0x23c   :  { %585 = vmatpush1.bf16.msra.mxu0 %v1553_v2  ;;  %626 = vmatpush1.bf16.msra.mxu1 %v1558_v4 }
 0x23d   :  { %586 = vmatprep.subr.bf16.mxu0 %v1561_v5  ;;  %627 = vmatprep.subr.bf16.mxu1 %v1566_v7 }
 0x23e   :  { %616 = vmatprep.mubr.bf16.mxu0 %v1493_v0  ;;  %657 = vmatprep.mubr.bf16.mxu1 %v1493_v0 }
 0x240   :  { %587 = vmatpush1.bf16.msra.mxu0 %v1563_v6  ;;  %628 = vmatpush1.bf16.msra.mxu1 %v1570_v8 }
 0x241   :  { %588 = vmatprep.subr.bf16.mxu0 %v1573_v9  ;;  %629 = vmatprep.subr.bf16.mxu1 %v1578_v11 }
 0x244   :  { %589 = vmatpush1.bf16.msra.mxu0 %v1576_v10  ;;  %630 = vmatpush1.bf16.msra.mxu1 %v1584_v13 }
 0x245   :  { %590 = vmatprep.subr.bf16.mxu0 %v1581_v12  ;;  %631 = vmatprep.subr.bf16.mxu1 %v1587_v14 }
 0x248   :  { %591 = vmatpush1.bf16.msra.mxu0 %v1590_v15  ;;  %632 = vmatpush1.bf16.msra.mxu1 %v1596_v17 }
 0x249   :  { %592 = vmatprep.subr.bf16.mxu0 %v1593_v16  ;;  %633 = vmatprep.subr.bf16.mxu1 %v1599_v18 }
 0x24c   :  { %593 = vmatpush1.bf16.msra.mxu0 %v1602_v19  ;;  %634 = vmatpush1.bf16.msra.mxu1 %v1608_v21 }
 0x24d   :  { %594 = vmatprep.subr.bf16.mxu0 %v1605_v20  ;;  %635 = vmatprep.subr.bf16.mxu1 %v1611_v22 }
 0x250   :  { %595 = vmatpush1.bf16.msra.mxu0 %v1614_v23  ;;  %636 = vmatpush1.bf16.msra.mxu1 %v1620_v25 }
 0x251   :  { %596 = vmatprep.subr.bf16.mxu0 %v1617_v24  ;;  %637 = vmatprep.subr.bf16.mxu1 %v1623_v26 }
 0x254   :  { %597 = vmatpush1.bf16.msra.mxu0 %v1626_v27  ;;  %638 = vmatpush1.bf16.msra.mxu1 %v1632_v29 }
 0x255   :  { %598 = vmatprep.subr.bf16.mxu0 %v1629_v28  ;;  %639 = vmatprep.subr.bf16.mxu1 %v1635_v30 }
 0x258   :  { %599 = vmatpush1.bf16.msra.mxu0 %v1638_v31  ;;  %640 = vmatpush1.bf16.msra.mxu1 %v1642_v32 }
 0x259   :  { %695 = vmatprep.subr.bf16.mxu0 %v1551_v1  ;;  %736 = vmatprep.subr.bf16.mxu1 %v1556_v3 }
 0x30e   :  { %v507_v45 = vpop.f32.mrb[8].mxu0  ;;  %v548_v46 = vpop.f32.mrb[8].mxu1 }
 0x30f   :  { %v555_v47 = vadd.f32 %v507_v45, %v469_v42  ;;  %v509_v48 = vpop.f32.mrb[9].mxu0  ;;  %v550_v49 = vpop.f32.mrb[9].mxu1  ;;  %v557_v53 = vadd.f32 %v548_v46, %v471_v44  ;;  %v579_v44 = vld [vmem:[#allocation2 + $0x38] sm:$0xff] }
 0x310   :  { %v556_v50 = vadd.f32 %v509_v48, %v470_v43  ;;  %v511_v51 = vpop.f32.mrb[10].mxu0  ;;  %v552_v52 = vpop.f32.mrb[10].mxu1  ;;  %v558_v57 = vadd.f32 %v550_v49, %v472_v56 }
 0x311   :  { %1290 = vtanh.f32 %v555_v47  ;;  %v512_v54 = vpop.f32.mrb[11].mxu0  ;;  %v553_v55 = vpop.f32.mrb[11].mxu1  ;;  %v582_v47 = vunpack.c.l.bf16 %v579_v44 }
 0x312   :  { %1292 = vtanh.f32 %v556_v50 }
 0x313   :  { %1294 = vtanh.f32 %v557_v53 }
 0x314   :  { %1296 = vtanh.f32 %v558_v57 }
 0x31b   :  { %v1291_v58 = vpop.eup %1290 }
 0x31c   :  { %v560_v59 = vmul.f32 0.5, %v1291_v58  ;;  %v1293_v60 = vpop.eup %1292 }
 0x31d   :  { %v563_v63 = vmul.f32 0.5, %v1293_v60  ;;  %v1295_v33 = vpop.eup %1294 }
 0x31e   :  { %v561_v62 = vadd.f32 0.5, %v560_v59  ;;  %v1297_v39 = vpop.eup %1296  ;;  %v583_v59 = vunpack.c.h.bf16 %v579_v44 }
 0x31f   :  { %v564_v35 = vadd.f32 0.5, %v563_v63  ;;  %v567_v40 = vmul.f32 0.5, %v1297_v39 }
 0x320   :  { %v570_v36 = vmul.f32 %v1295_v33, %v561_v62 }
 0x321   :  { %v569_v37 = vmul.f32 %v564_v35, %v1721_v34  ;;  %v568_v61 = vadd.f32 0.5, %v567_v40  ;;  %v578_v34 = vld [vmem:[#allocation2 + $0x30] sm:$0xff] }
 0x322   :  { %v580_v45 = vunpack.c.l.bf16 %v578_v34  ;;  %v581_v46 = vunpack.c.h.bf16 %v578_v34 }
 0x323   :  { %v1759_v38 = vadd.f32 %v570_v36, %v569_v37 }
 0x325   :  { %1298 = vtanh.f32 %v1759_v38 }
 0x32f   :  { %v1299_v41 = vpop.eup %1298 }
 0x330   :  { %v573_v42 = vmul.f32 %v1299_v41, %v568_v61 }
 0x332   :  { %v574_v43 = vpack.c.bf16 %v573_v42, %v573_v42 }
 0x334   :  { %576 = vst [vmem:[#allocation7 + $0x8] sm:$0xf] %v574_v43  ;;  %617 = vmatmul.mubr.bf16.vlgmr.msra.gmra.mrb[12].mxu0 %v574_v43  ;;  %658 = vmatmul.mubr.bf16.vlgmr.msra.gmra.mrb[12].mxu1 %v574_v43 }
 0x335   :  { %696 = vmatpush1.bf16.msra.mxu0 %v1553_v2  ;;  %737 = vmatpush1.bf16.msra.mxu1 %v1558_v4 }
 0x336   :  { %697 = vmatprep.subr.bf16.mxu0 %v1561_v5  ;;  %738 = vmatprep.subr.bf16.mxu1 %v1566_v7 }
 0x337   :  { %727 = vmatprep.mubr.bf16.mxu0 %v1493_v0  ;;  %768 = vmatprep.mubr.bf16.mxu1 %v1493_v0 }
 0x339   :  { %698 = vmatpush1.bf16.msra.mxu0 %v1563_v6  ;;  %739 = vmatpush1.bf16.msra.mxu1 %v1570_v8 }
 0x33a   :  { %699 = vmatprep.subr.bf16.mxu0 %v1573_v9  ;;  %740 = vmatprep.subr.bf16.mxu1 %v1578_v11 }
 0x33d   :  { %700 = vmatpush1.bf16.msra.mxu0 %v1576_v10  ;;  %741 = vmatpush1.bf16.msra.mxu1 %v1584_v13 }
 0x33e   :  { %701 = vmatprep.subr.bf16.mxu0 %v1581_v12  ;;  %742 = vmatprep.subr.bf16.mxu1 %v1587_v14 }
 0x341   :  { %702 = vmatpush1.bf16.msra.mxu0 %v1590_v15  ;;  %743 = vmatpush1.bf16.msra.mxu1 %v1596_v17 }
 0x342   :  { %703 = vmatprep.subr.bf16.mxu0 %v1593_v16  ;;  %744 = vmatprep.subr.bf16.mxu1 %v1599_v18 }
 0x345   :  { %704 = vmatpush1.bf16.msra.mxu0 %v1602_v19  ;;  %745 = vmatpush1.bf16.msra.mxu1 %v1608_v21 }
 0x346   :  { %705 = vmatprep.subr.bf16.mxu0 %v1605_v20  ;;  %746 = vmatprep.subr.bf16.mxu1 %v1611_v22 }
 0x349   :  { %706 = vmatpush1.bf16.msra.mxu0 %v1614_v23  ;;  %747 = vmatpush1.bf16.msra.mxu1 %v1620_v25 }
 0x34a   :  { %707 = vmatprep.subr.bf16.mxu0 %v1617_v24  ;;  %748 = vmatprep.subr.bf16.mxu1 %v1623_v26 }
 0x34d   :  { %708 = vmatpush1.bf16.msra.mxu0 %v1626_v27  ;;  %749 = vmatpush1.bf16.msra.mxu1 %v1632_v29 }
 0x34e   :  { %709 = vmatprep.subr.bf16.mxu0 %v1629_v28  ;;  %750 = vmatprep.subr.bf16.mxu1 %v1635_v30 }
 0x351   :  { %710 = vmatpush1.bf16.msra.mxu0 %v1638_v31  ;;  %751 = vmatpush1.bf16.msra.mxu1 %v1642_v32 }
 0x352   :  { %806 = vmatprep.subr.bf16.mxu0 %v1551_v1  ;;  %847 = vmatprep.subr.bf16.mxu1 %v1556_v3 }
 0x407   :  { %v618_v48 = vpop.f32.mrb[12].mxu0  ;;  %v659_v49 = vpop.f32.mrb[12].mxu1 }
 0x408   :  { %v666_v50 = vadd.f32 %v618_v48, %v580_v45  ;;  %v620_v51 = vpop.f32.mrb[13].mxu0  ;;  %v661_v52 = vpop.f32.mrb[13].mxu1  ;;  %v668_v56 = vadd.f32 %v659_v49, %v582_v47  ;;  %v690_v47 = vld [vmem:[#allocation2 + $0x48] sm:$0xff] }
 0x409   :  { %v667_v53 = vadd.f32 %v620_v51, %v581_v46  ;;  %v622_v54 = vpop.f32.mrb[14].mxu0  ;;  %v663_v55 = vpop.f32.mrb[14].mxu1  ;;  %v669_v60 = vadd.f32 %v661_v52, %v583_v59 }
 0x40a   :  { %1300 = vtanh.f32 %v666_v50  ;;  %v623_v57 = vpop.f32.mrb[15].mxu0  ;;  %v664_v58 = vpop.f32.mrb[15].mxu1  ;;  %v693_v50 = vunpack.c.l.bf16 %v690_v47 }
 0x40b   :  { %1302 = vtanh.f32 %v667_v53 }
 0x40c   :  { %1304 = vtanh.f32 %v668_v56 }
 0x40d   :  { %1306 = vtanh.f32 %v669_v60 }
 0x414   :  { %v1301_v62 = vpop.eup %1300 }
 0x415   :  { %v671_v63 = vmul.f32 0.5, %v1301_v62  ;;  %v1303_v33 = vpop.eup %1302 }
 0x416   :  { %v674_v36 = vmul.f32 0.5, %v1303_v33  ;;  %v1305_v37 = vpop.eup %1304 }
 0x417   :  { %v672_v35 = vadd.f32 0.5, %v671_v63  ;;  %v1307_v42 = vpop.eup %1306 }
 0x418   :  { %v675_v39 = vadd.f32 0.5, %v674_v36  ;;  %v678_v43 = vmul.f32 0.5, %v1307_v42 }
 0x419   :  { %v681_v40 = vmul.f32 %v1305_v37, %v672_v35 }
 0x41a   :  { %v680_v61 = vmul.f32 %v675_v39, %v1759_v38  ;;  %v679_v34 = vadd.f32 0.5, %v678_v43  ;;  %v689_v38 = vld [vmem:[#allocation2 + $0x40] sm:$0xff] }
 0x41b   :  { %v691_v48 = vunpack.c.l.bf16 %v689_v38  ;;  %v692_v49 = vunpack.c.h.bf16 %v689_v38 }
 0x41c   :  { %v1797_v41 = vadd.f32 %v681_v40, %v680_v61 }
 0x41e   :  { %1308 = vtanh.f32 %v1797_v41 }
 0x428   :  { %v1309_v44 = vpop.eup %1308 }
 0x429   :  { %v684_v45 = vmul.f32 %v1309_v44, %v679_v34 }
 0x42b   :  { %v685_v46 = vpack.c.bf16 %v684_v45, %v684_v45 }
 0x42d   :  { %687 = vst [vmem:[#allocation7 + $0xc] sm:$0xf] %v685_v46  ;;  %728 = vmatmul.mubr.bf16.vlgmr.msra.gmra.mrb[16].mxu0 %v685_v46  ;;  %769 = vmatmul.mubr.bf16.vlgmr.msra.gmra.mrb[16].mxu1 %v685_v46 }
 0x42e   :  { %807 = vmatpush1.bf16.msra.mxu0 %v1553_v2  ;;  %848 = vmatpush1.bf16.msra.mxu1 %v1558_v4 }
 0x42f   :  { %808 = vmatprep.subr.bf16.mxu0 %v1561_v5  ;;  %849 = vmatprep.subr.bf16.mxu1 %v1566_v7 }
 0x430   :  { %838 = vmatprep.mubr.bf16.mxu0 %v1493_v0  ;;  %879 = vmatprep.mubr.bf16.mxu1 %v1493_v0 }
 0x432   :  { %809 = vmatpush1.bf16.msra.mxu0 %v1563_v6  ;;  %850 = vmatpush1.bf16.msra.mxu1 %v1570_v8 }
 0x433   :  { %810 = vmatprep.subr.bf16.mxu0 %v1573_v9  ;;  %851 = vmatprep.subr.bf16.mxu1 %v1578_v11 }
 0x436   :  { %811 = vmatpush1.bf16.msra.mxu0 %v1576_v10  ;;  %852 = vmatpush1.bf16.msra.mxu1 %v1584_v13 }
 0x437   :  { %812 = vmatprep.subr.bf16.mxu0 %v1581_v12  ;;  %853 = vmatprep.subr.bf16.mxu1 %v1587_v14 }
 0x43a   :  { %813 = vmatpush1.bf16.msra.mxu0 %v1590_v15  ;;  %854 = vmatpush1.bf16.msra.mxu1 %v1596_v17 }
 0x43b   :  { %814 = vmatprep.subr.bf16.mxu0 %v1593_v16  ;;  %855 = vmatprep.subr.bf16.mxu1 %v1599_v18 }
 0x43e   :  { %815 = vmatpush1.bf16.msra.mxu0 %v1602_v19  ;;  %856 = vmatpush1.bf16.msra.mxu1 %v1608_v21 }
 0x43f   :  { %816 = vmatprep.subr.bf16.mxu0 %v1605_v20  ;;  %857 = vmatprep.subr.bf16.mxu1 %v1611_v22 }
 0x442   :  { %817 = vmatpush1.bf16.msra.mxu0 %v1614_v23  ;;  %858 = vmatpush1.bf16.msra.mxu1 %v1620_v25 }
 0x443   :  { %818 = vmatprep.subr.bf16.mxu0 %v1617_v24  ;;  %859 = vmatprep.subr.bf16.mxu1 %v1623_v26 }
 0x446   :  { %819 = vmatpush1.bf16.msra.mxu0 %v1626_v27  ;;  %860 = vmatpush1.bf16.msra.mxu1 %v1632_v29 }
 0x447   :  { %820 = vmatprep.subr.bf16.mxu0 %v1629_v28  ;;  %861 = vmatprep.subr.bf16.mxu1 %v1635_v30 }
 0x44a   :  { %821 = vmatpush1.bf16.msra.mxu0 %v1638_v31  ;;  %862 = vmatpush1.bf16.msra.mxu1 %v1642_v32 }
 0x44b   :  { %917 = vmatprep.subr.bf16.mxu0 %v1551_v1  ;;  %958 = vmatprep.subr.bf16.mxu1 %v1556_v3  ;;  %v694_v1 = vunpack.c.h.bf16 %v690_v47 }
 0x500   :  { %v729_v51 = vpop.f32.mrb[16].mxu0  ;;  %v770_v52 = vpop.f32.mrb[16].mxu1 }
 0x501   :  { %v777_v53 = vadd.f32 %v729_v51, %v691_v48  ;;  %v731_v54 = vpop.f32.mrb[17].mxu0  ;;  %v772_v55 = vpop.f32.mrb[17].mxu1  ;;  %v779_v59 = vadd.f32 %v770_v52, %v693_v50 }
 0x502   :  { %v778_v56 = vadd.f32 %v731_v54, %v692_v49  ;;  %v733_v57 = vpop.f32.mrb[18].mxu0  ;;  %v774_v58 = vpop.f32.mrb[18].mxu1  ;;  %v780_v63 = vadd.f32 %v772_v55, %v694_v1  ;;  %v1351_v1 = vld [vmem:[#allocation5] ss:$16 sps:$4 sm:$0xff]  }
 0x503   :  { %1310 = vtanh.f32 %v777_v53  ;;  %v734_v60 = vpop.f32.mrb[19].mxu0  ;;  %v775_v62 = vpop.f32.mrb[19].mxu1 }
 0x504   :  { %1312 = vtanh.f32 %v778_v56 }
 0x505   :  { %1314 = vtanh.f32 %v779_v59 }
 0x506   :  { %1316 = vtanh.f32 %v780_v63  ;;  %v1352_v63 = vld [vmem:[#allocation5 + $0x8] ss:$16 sps:$4 sm:$0xff]  }
 0x50d   :  { %v1311_v33 = vpop.eup %1310 }
 0x50e   :  { %v782_v35 = vmul.f32 0.5, %v1311_v33  ;;  %v1313_v36 = vpop.eup %1312  ;;  %v1353_v33 = vld [vmem:[#allocation5 + $0x24] ss:$16 sps:$4 sm:$0xff]  }
 0x50f   :  { %v785_v39 = vmul.f32 0.5, %v1313_v36  ;;  %v1315_v40 = vpop.eup %1314  ;;  %v1355_v36 = vld [vmem:[#allocation5 + $0x20] ss:$16 sps:$4 sm:$0xff]  }
 0x510   :  { %v783_v37 = vadd.f32 0.5, %v782_v35  ;;  %v1317_v44 = vpop.eup %1316  ;;  %v1354_v35 = vld [vmem:[#allocation5 + $0x2c] ss:$16 sps:$4 sm:$0xff]  }
 0x511   :  { %v786_v61 = vadd.f32 0.5, %v785_v39  ;;  %v789_v45 = vmul.f32 0.5, %v1317_v44  ;;  %v1357_v39 = vld [vmem:[#allocation5 + $0x44] ss:$16 sps:$4 sm:$0xff]   ;;  %v1363_v44 = vld [vmem:[#allocation5 + $0x60] ss:$16 sps:$4 sm:$0xff]  }
 0x512   :  { %v792_v42 = vmul.f32 %v1315_v40, %v783_v37  ;;  %v1356_v37 = vld [vmem:[#allocation5 + $0x28] ss:$16 sps:$4 sm:$0xff]   ;;  %v1358_v40 = vld [vmem:[#allocation5 + $0x4c] ss:$16 sps:$4 sm:$0xff]  }
 0x513   :  { %v791_v43 = vmul.f32 %v786_v61, %v1797_v41  ;;  %v790_v46 = vadd.f32 0.5, %v789_v45  ;;  %v1359_v61 = vld [vmem:[#allocation5 + $0x40] ss:$16 sps:$4 sm:$0xff]   ;;  %v1364_v45 = vld [vmem:[#allocation5 + $0x68] ss:$16 sps:$4 sm:$0xff]  }
 0x515   :  { %v1835_v34 = vadd.f32 %v792_v42, %v791_v43  ;;  %v1360_v42 = vld [vmem:[#allocation5 + $0x48] ss:$16 sps:$4 sm:$0xff]   ;;  %v1361_v43 = vld [vmem:[#allocation5 + $0x64] ss:$16 sps:$4 sm:$0xff]  }
 0x517   :  { %1318 = vtanh.f32 %v1835_v34 }
 0x521   :  { %v1319_v38 = vpop.eup %1318 }
 0x522   :  { %v795_v47 = vmul.f32 %v1319_v38, %v790_v46  ;;  %v1366_v46 = vld [vmem:[#allocation5 + $0x8c] ss:$16 sps:$4 sm:$0xff]   ;;  %v1367_v38 = vld [vmem:[#allocation5 + $0x80] ss:$16 sps:$4 sm:$0xff]  }
 0x524   :  { %v796_v48 = vpack.c.bf16 %v795_v47, %v795_v47  ;;  %v1368_v47 = vld [vmem:[#allocation5 + $0x88] ss:$16 sps:$4 sm:$0xff]  }
 0x526   :  { %798 = vst [vmem:[#allocation7 + $0x10] sm:$0xf] %v796_v48  ;;  %839 = vmatmul.mubr.bf16.vlgmr.msra.gmra.mrb[20].mxu0 %v796_v48  ;;  %880 = vmatmul.mubr.bf16.vlgmr.msra.gmra.mrb[20].mxu1 %v796_v48  ;;  %v1369_v48 = vld [vmem:[#allocation5 + $0xa4] ss:$16 sps:$4 sm:$0xff]  }
 0x527   :  { %918 = vmatpush1.bf16.msra.mxu0 %v1553_v2  ;;  %959 = vmatpush1.bf16.msra.mxu1 %v1558_v4  ;;  %v1350_v2 = vld [vmem:[#allocation5 + $0x4] ss:$16 sps:$4 sm:$0xff]  }
 0x528   :  { %919 = vmatprep.subr.bf16.mxu0 %v1561_v5  ;;  %960 = vmatprep.subr.bf16.mxu1 %v1566_v7  ;;  %v800_v4 = vld [vmem:[#allocation2 + $0x50] sm:$0xff]  ;;  %v801_v5 = vld [vmem:[#allocation2 + $0x58] sm:$0xff] }
 0x529   :  { %949 = vmatprep.mubr.bf16.mxu0 %v1493_v0  ;;  %990 = vmatprep.mubr.bf16.mxu1 %v1493_v0  ;;  %v803_v7 = vunpack.c.h.bf16 %v800_v4 }
 0x52b   :  { %920 = vmatpush1.bf16.msra.mxu0 %v1563_v6  ;;  %961 = vmatpush1.bf16.msra.mxu1 %v1570_v8  ;;  %v802_v6 = vunpack.c.l.bf16 %v800_v4  ;;  %v804_v8 = vunpack.c.l.bf16 %v801_v5  ;;  %v911_v4 = vld [vmem:[#allocation2 + $0x60] sm:$0xff] }
 0x52c   :  { %921 = vmatprep.subr.bf16.mxu0 %v1573_v9  ;;  %962 = vmatprep.subr.bf16.mxu1 %v1578_v11 }
 0x52f   :  { %922 = vmatpush1.bf16.msra.mxu0 %v1576_v10  ;;  %963 = vmatpush1.bf16.msra.mxu1 %v1584_v13 }
 0x530   :  { %923 = vmatprep.subr.bf16.mxu0 %v1581_v12  ;;  %964 = vmatprep.subr.bf16.mxu1 %v1587_v14 }
 0x533   :  { %924 = vmatpush1.bf16.msra.mxu0 %v1590_v15  ;;  %965 = vmatpush1.bf16.msra.mxu1 %v1596_v17 }
 0x534   :  { %925 = vmatprep.subr.bf16.mxu0 %v1593_v16  ;;  %966 = vmatprep.subr.bf16.mxu1 %v1599_v18 }
 0x537   :  { %926 = vmatpush1.bf16.msra.mxu0 %v1602_v19  ;;  %967 = vmatpush1.bf16.msra.mxu1 %v1608_v21 }
 0x538   :  { %927 = vmatprep.subr.bf16.mxu0 %v1605_v20  ;;  %968 = vmatprep.subr.bf16.mxu1 %v1611_v22 }
 0x53b   :  { %928 = vmatpush1.bf16.msra.mxu0 %v1614_v23  ;;  %969 = vmatpush1.bf16.msra.mxu1 %v1620_v25 }
 0x53c   :  { %929 = vmatprep.subr.bf16.mxu0 %v1617_v24  ;;  %970 = vmatprep.subr.bf16.mxu1 %v1623_v26 }
 0x53f   :  { %930 = vmatpush1.bf16.msra.mxu0 %v1626_v27  ;;  %971 = vmatpush1.bf16.msra.mxu1 %v1632_v29 }
 0x540   :  { %931 = vmatprep.subr.bf16.mxu0 %v1629_v28  ;;  %972 = vmatprep.subr.bf16.mxu1 %v1635_v30 }
 0x543   :  { %932 = vmatpush1.bf16.msra.mxu0 %v1638_v31  ;;  %973 = vmatpush1.bf16.msra.mxu1 %v1642_v32 }
 0x544   :  { %1028 = vmatprep.subr.bf16.mxu0 %v1350_v2  ;;  %1069 = vmatprep.subr.bf16.mxu1 %v1556_v3  ;;  %v805_v3 = vunpack.c.h.bf16 %v801_v5  ;;  %v1370_v2 = vld [vmem:[#allocation5 + $0xac] ss:$16 sps:$4 sm:$0xff]   ;;  %v913_v5 = vunpack.c.l.bf16 %v911_v4 }
 0x5f9   :  { %v840_v9 = vpop.f32.mrb[20].mxu0  ;;  %v881_v10 = vpop.f32.mrb[20].mxu1 }
 0x5fa   :  { %v888_v11 = vadd.f32 %v840_v9, %v802_v6  ;;  %v842_v12 = vpop.f32.mrb[21].mxu0  ;;  %v883_v13 = vpop.f32.mrb[21].mxu1  ;;  %v890_v17 = vadd.f32 %v881_v10, %v804_v8 }
 0x5fb   :  { %v889_v14 = vadd.f32 %v842_v12, %v803_v7  ;;  %v844_v15 = vpop.f32.mrb[22].mxu0  ;;  %v885_v16 = vpop.f32.mrb[22].mxu1  ;;  %v891_v20 = vadd.f32 %v883_v13, %v805_v3 }
 0x5fc   :  { %1320 = vtanh.f32 %v888_v11  ;;  %v845_v18 = vpop.f32.mrb[23].mxu0  ;;  %v886_v19 = vpop.f32.mrb[23].mxu1 }
 0x5fd   :  { %1322 = vtanh.f32 %v889_v14 }
 0x5fe   :  { %1324 = vtanh.f32 %v890_v17 }
 0x5ff   :  { %1326 = vtanh.f32 %v891_v20 }
 0x606   :  { %v1321_v21 = vpop.eup %1320 }
 0x607   :  { %v893_v22 = vmul.f32 0.5, %v1321_v21  ;;  %v1323_v41 = vpop.eup %1322 }
 0x608   :  { %v896_v50 = vmul.f32 0.5, %v1323_v41  ;;  %v1325_v51 = vpop.eup %1324 }
 0x609   :  { %v894_v49 = vadd.f32 0.5, %v893_v22  ;;  %v1327_v56 = vpop.eup %1326 }
 0x60a   :  { %v897_v52 = vadd.f32 0.5, %v896_v50  ;;  %v900_v57 = vmul.f32 0.5, %v1327_v56 }
 0x60b   :  { %v903_v53 = vmul.f32 %v1325_v51, %v894_v49 }
 0x60c   :  { %v902_v54 = vmul.f32 %v897_v52, %v1835_v34  ;;  %v901_v58 = vadd.f32 0.5, %v900_v57  ;;  %v1362_v34 = vld [vmem:[#allocation5 + $0x6c] ss:$16 sps:$4 sm:$0xff]   ;;  %v1022_v52 = vld [vmem:[#allocation2 + $0x70] sm:$0xff] }
 0x60d   :  { %v1025_v56 = vunpack.c.h.bf16 %v1022_v52 }
 0x60e   :  { %v1872_v55 = vadd.f32 %v903_v53, %v902_v54  ;;  %v1023_v53 = vld [vmem:[#allocation2 + $0x78] sm:$0xff]  ;;  %v1024_v54 = vunpack.c.l.bf16 %v1022_v52 }
 0x60f   :  { %v1026_v57 = vunpack.c.l.bf16 %v1023_v53 }
 0x610   :  { %1328 = vtanh.f32 %v1872_v55 }
 0x61a   :  { %v1329_v59 = vpop.eup %1328 }
 0x61b   :  { %v906_v60 = vmul.f32 %v1329_v59, %v901_v58 }
 0x61d   :  { %v907_v62 = vpack.c.bf16 %v906_v60, %v906_v60 }
 0x61f   :  { %909 = vst [vmem:[#allocation7 + $0x14] sm:$0xf] %v907_v62  ;;  %950 = vmatmul.mubr.bf16.vlgmr.msra.gmra.mrb[24].mxu0 %v907_v62  ;;  %991 = vmatmul.mubr.bf16.vlgmr.msra.gmra.mrb[24].mxu1 %v907_v62 }
 0x620   :  { %1029 = vmatpush1.bf16.msra.mxu0 %v1351_v1  ;;  %1070 = vmatpush1.bf16.msra.mxu1 %v1352_v63 }
 0x621   :  { %1030 = vmatprep.subr.bf16.mxu0 %v1353_v33  ;;  %1071 = vmatprep.subr.bf16.mxu1 %v1354_v35 }
 0x622   :  { %1060 = vmatprep.mubr.bf16.mxu0 %v1493_v0  ;;  %1101 = vmatprep.mubr.bf16.mxu1 %v1493_v0  ;;  %v1365_v0 = vld [vmem:[#allocation5 + $0x84] ss:$16 sps:$4 sm:$0xff]  }
 0x624   :  { %1031 = vmatpush1.bf16.msra.mxu0 %v1355_v36  ;;  %1072 = vmatpush1.bf16.msra.mxu1 %v1356_v37 }
 0x625   :  { %1032 = vmatprep.subr.bf16.mxu0 %v1357_v39  ;;  %1073 = vmatprep.subr.bf16.mxu1 %v1358_v40  ;;  %v1027_v39 = vunpack.c.h.bf16 %v1023_v53 }
 0x628   :  { %1033 = vmatpush1.bf16.msra.mxu0 %v1359_v61  ;;  %1074 = vmatpush1.bf16.msra.mxu1 %v1360_v42 }
 0x629   :  { %1034 = vmatprep.subr.bf16.mxu0 %v1361_v43  ;;  %1075 = vmatprep.subr.bf16.mxu1 %v1362_v34 }
 0x62c   :  { %1035 = vmatpush1.bf16.msra.mxu0 %v1363_v44  ;;  %1076 = vmatpush1.bf16.msra.mxu1 %v1364_v45 }
 0x62d   :  { %1036 = vmatprep.subr.bf16.mxu0 %v1365_v0  ;;  %1077 = vmatprep.subr.bf16.mxu1 %v1366_v46 }
 0x630   :  { %1037 = vmatpush1.bf16.msra.mxu0 %v1367_v38  ;;  %1078 = vmatpush1.bf16.msra.mxu1 %v1368_v47 }
 0x631   :  { %1038 = vmatprep.subr.bf16.mxu0 %v1369_v48  ;;  %1079 = vmatprep.subr.bf16.mxu1 %v1370_v2 }
 0x634   :  { %1039 = vmatpush1.bf16.msra.mxu0 %v1614_v23  ;;  %1080 = vmatpush1.bf16.msra.mxu1 %v1620_v25  ;;  %v912_v23 = vld [vmem:[#allocation2 + $0x68] sm:$0xff]  ;;  %v914_v25 = vunpack.c.h.bf16 %v911_v4 }
 0x635   :  { %1040 = vmatprep.subr.bf16.mxu0 %v1617_v24  ;;  %1081 = vmatprep.subr.bf16.mxu1 %v1623_v26  ;;  %v915_v6 = vunpack.c.l.bf16 %v912_v23 }
 0x638   :  { %1041 = vmatpush1.bf16.msra.mxu0 %v1626_v27  ;;  %1082 = vmatpush1.bf16.msra.mxu1 %v1632_v29 }
 0x639   :  { %1042 = vmatprep.subr.bf16.mxu0 %v1629_v28  ;;  %1083 = vmatprep.subr.bf16.mxu1 %v1635_v30 }
 0x63c   :  { %1043 = vmatpush1.bf16.msra.mxu0 %v1638_v31  ;;  %1084 = vmatpush1.bf16.msra.mxu1 %v1642_v32  ;;  %v916_v31 = vunpack.c.h.bf16 %v912_v23 }
 0x6f2   :  { %v951_v24 = vpop.f32.mrb[24].mxu0  ;;  %v992_v7 = vpop.f32.mrb[24].mxu1 }
 0x6f3   :  { %v999_v26 = vadd.f32 %v951_v24, %v913_v5  ;;  %v953_v8 = vpop.f32.mrb[25].mxu0  ;;  %v994_v27 = vpop.f32.mrb[25].mxu1  ;;  %v1001_v28 = vadd.f32 %v992_v7, %v915_v6 }
 0x6f4   :  { %v1000_v9 = vadd.f32 %v953_v8, %v914_v25  ;;  %v955_v29 = vpop.f32.mrb[26].mxu0  ;;  %v996_v10 = vpop.f32.mrb[26].mxu1  ;;  %v1002_v32 = vadd.f32 %v994_v27, %v916_v31 }
 0x6f5   :  { %1330 = vtanh.f32 %v999_v26  ;;  %v956_v30 = vpop.f32.mrb[27].mxu0  ;;  %v997_v11 = vpop.f32.mrb[27].mxu1 }
 0x6f6   :  { %1332 = vtanh.f32 %v1000_v9 }
 0x6f7   :  { %1334 = vtanh.f32 %v1001_v28 }
 0x6f8   :  { %1336 = vtanh.f32 %v1002_v32 }
 0x6ff   :  { %v1331_v12 = vpop.eup %1330 }
 0x700   :  { %v1004_v13 = vmul.f32 0.5, %v1331_v12  ;;  %v1333_v14 = vpop.eup %1332 }
 0x701   :  { %v1007_v16 = vmul.f32 0.5, %v1333_v14  ;;  %v1335_v17 = vpop.eup %1334 }
 0x702   :  { %v1005_v15 = vadd.f32 0.5, %v1004_v13  ;;  %v1337_v21 = vpop.eup %1336 }
 0x703   :  { %v1008_v18 = vadd.f32 0.5, %v1007_v16  ;;  %v1011_v22 = vmul.f32 0.5, %v1337_v21 }
 0x704   :  { %v1014_v19 = vmul.f32 %v1335_v17, %v1005_v15 }
 0x705   :  { %v1013_v3 = vmul.f32 %v1008_v18, %v1872_v55  ;;  %v1012_v41 = vadd.f32 0.5, %v1011_v22 }
 0x707   :  { %v1015_v20 = vadd.f32 %v1014_v19, %v1013_v3 }
 0x709   :  { %1338 = vtanh.f32 %v1015_v20 }
 0x713   :  { %v1339_v49 = vpop.eup %1338 }
 0x714   :  { %v1017_v50 = vmul.f32 %v1339_v49, %v1012_v41 }
 0x716   :  { %v1018_v51 = vpack.c.bf16 %v1017_v50, %v1017_v50 }
 0x718   :  { %1020 = vst [vmem:[#allocation7 + $0x18] sm:$0xf] %v1018_v51  ;;  %1061 = vmatmul.mubr.bf16.vlgmr.msra.gmra.mrb[28].mxu0 %v1018_v51  ;;  %1102 = vmatmul.mubr.bf16.vlgmr.msra.gmra.mrb[28].mxu1 %v1018_v51 }
 0x7eb   :  { %v1062_v58 = vpop.f32.mrb[28].mxu0  ;;  %v1103_v59 = vpop.f32.mrb[28].mxu1 }
 0x7ec   :  { %v1110_v60 = vadd.f32 %v1062_v58, %v1024_v54  ;;  %v1064_v55 = vpop.f32.mrb[29].mxu0  ;;  %v1105_v62 = vpop.f32.mrb[29].mxu1  ;;  %v1112_v35 = vadd.f32 %v1103_v59, %v1026_v57 }
 0x7ed   :  { %v1111_v1 = vadd.f32 %v1064_v55, %v1025_v56  ;;  %v1066_v63 = vpop.f32.mrb[30].mxu0  ;;  %v1107_v33 = vpop.f32.mrb[30].mxu1  ;;  %v1113_v40 = vadd.f32 %v1105_v62, %v1027_v39 }
 0x7ee   :  { %1340 = vtanh.f32 %v1110_v60  ;;  %v1067_v36 = vpop.f32.mrb[31].mxu0  ;;  %v1108_v37 = vpop.f32.mrb[31].mxu1 }
 0x7ef   :  { %1342 = vtanh.f32 %v1111_v1 }
 0x7f0   :  { %1344 = vtanh.f32 %v1112_v35 }
 0x7f1   :  { %1346 = vtanh.f32 %v1113_v40 }
 0x7f8   :  { %v1341_v61 = vpop.eup %1340 }
 0x7f9   :  { %v1115_v42 = vmul.f32 0.5, %v1341_v61  ;;  %v1343_v43 = vpop.eup %1342 }
 0x7fa   :  { %v1118_v44 = vmul.f32 0.5, %v1343_v43  ;;  %v1345_v45 = vpop.eup %1344 }
 0x7fb   :  { %v1116_v34 = vadd.f32 0.5, %v1115_v42  ;;  %v1347_v48 = vpop.eup %1346 }
 0x7fc   :  { %v1119_v0 = vadd.f32 0.5, %v1118_v44  ;;  %v1122_v2 = vmul.f32 0.5, %v1347_v48 }
 0x7fd   :  { %v1125_v46 = vmul.f32 %v1345_v45, %v1116_v34 }
 0x7fe   :  { %v1124_v38 = vmul.f32 %v1119_v0, %v1015_v20  ;;  %v1123_v4 = vadd.f32 0.5, %v1122_v2 }
 0x800   :  { %v1126_v47 = vadd.f32 %v1125_v46, %v1124_v38 }
 0x802   :  { %1348 = vtanh.f32 %v1126_v47  ;;  %1133 = vst [vmem:[#allocation10] sm:$0xff] %v1126_v47 }
 0x80c   :  { %v1349_v23 = vpop.eup %1348 }
 0x80d   :  { %v1128_v5 = vmul.f32 %v1349_v23, %v1123_v4 }
 0x80f   :  { %v1129_v25 = vpack.c.bf16 %v1128_v5, %v1128_v5  ;;  %1132 = vst [vmem:[#allocation8] sm:$0xff] %v1128_v5 }
 0x810   :  { %1426 = shalt.err (!%p1423_p6)
}
 0x811   :  { %s1427_s22 = scalar_lea.hbm %s1941_s3, 128 }
 0x812   :  { %p1428_p7 = scmp.ne.s32.totalorder %s1941_s3, %s1427_s22  ;;  %p1431_p8 = scmp.lt.u32.totalorder %s1427_s22, %s1941_s3 }
 0x814   :  { %p1433_p9 = pnand %p1431_p8, %p1428_p7 }
 0x816   :  { %1436 = shalt.err (!%p1433_p9)
}
 0x817   :  { %1155 = dma.vmem_to_hbm [thread:$0]  %s1153_s14, 128, %s1941_s3, [#allocation9]   ;;  %1131 = vst [vmem:[#allocation7 + $0x1c] sm:$0xf] %v1129_v25 }
 0x818   :  { %s1437_s29 = scalar_lea.vmem %s1890_s18, 128  ;;  %p1442_p11 = scmp.lt.s32.totalorder %s1890_s18, %s1890_s18 }
 0x819   :  { %p1438_p10 = scmp.ne.s32.totalorder %s1890_s18, %s1437_s29  ;;  %p1443_p12 = scmp.lt.s32.totalorder %s1437_s29, %s1437_s29 }
 0x81b   :  { %p1444_p13 = por %p1443_p12, %p1442_p11 }
 0x81d   :  { %p1445_p0 = pnand %p1444_p13, %p1438_p10 }
 0x81f   :  { %1448 = shalt.err (!%p1445_p0)
}
 0x820   :  { %s1449_s6 = scalar_lea.hbm %s1942_s4, 128 }
 0x821   :  { %p1450_p1 = scmp.ne.s32.totalorder %s1942_s4, %s1449_s6  ;;  %p1453_p2 = scmp.lt.u32.totalorder %s1449_s6, %s1942_s4 }
 0x823   :  { %p1455_p3 = pnand %p1453_p2, %p1450_p1 }
 0x825   :  { %1458 = shalt.err (!%p1455_p3)
}
 0x826   :  { %1165 = dma.vmem_to_hbm [thread:$0]  %s1890_s18, 128, %s1942_s4, [#allocation9]  }
 0x827   :  { %s1459_s12 = scalar_lea.vmem %s1888_s16, 512  ;;  %p1464_p5 = scmp.lt.s32.totalorder %s1888_s16, %s1888_s16 }
 0x828   :  { %p1460_p4 = scmp.ne.s32.totalorder %s1888_s16, %s1459_s12  ;;  %p1465_p6 = scmp.lt.s32.totalorder %s1459_s12, %s1459_s12 }
 0x82a   :  { %p1466_p7 = por %p1465_p6, %p1464_p5 }
 0x82c   :  { %p1467_p8 = pnand %p1466_p7, %p1460_p4 }
 0x82e   :  { %1470 = shalt.err (!%p1467_p8)
}
 0x82f   :  { %s1471_s1 = scalar_lea.hbm %s1940_s2, 512 }
 0x830   :  { %p1472_p9 = scmp.ne.s32.totalorder %s1940_s2, %s1471_s1  ;;  %p1475_p10 = scmp.lt.u32.totalorder %s1471_s1, %s1940_s2 }
 0x832   :  { %p1477_p11 = pnand %p1475_p10, %p1472_p9 }
 0x834   :  { %1480 = shalt.err (!%p1477_p11)
}
 0x835   :  { %s1498_s4 = smov 64   ;;  %s1499_s18 = smov 4  }
 0x836   :  { %1145 = dma.vmem_to_hbm [thread:$0]  %s1888_s16, 512, %s1940_s2, [#allocation4], %s1498_s4, %s1498_s4, %s1499_s18  }
 0x837   :  { %1485 = dma.done.wait [#allocation4], 512  }
 0x838   :  { %1486 = vsyncadd [#allocation4], 4294966784 }
 0x839   :  { %1487 = dma.done.wait [#allocation9], 256  }
 0x83a   :  { %1488 = vsyncadd [#allocation9], 4294967040 }
 0x83b   :  { %1175 = vsyncpa [#allocation3], 1 }
 0x83c   :  { %1176 = vsyncpa [#allocation6], 1 }
 0x83d   :  { %1177 = vsyncpa [#allocation4], 1 }
 0x83e   :  { %1178 = vsyncpa [#allocation9], 1 }

</bundles_post_ra>
